<compile_context>
chip_gen: v6e
topology: v6e:2x2x1
jax: 0.10.0
libtpu: 0.0.40
codegen_flags: <defaults>
</compile_context>

<pallas_src>
import jax
import jax.numpy as jnp
from jax import lax
from jax.experimental import pallas as pl
from jax.experimental.pallas import tpu as pltpu

# ----------------------------- tiny BERT config ------------------------------
VOCAB = 100
MAX_POS = 16
TYPE_VOCAB = 2
BATCH = 2
SEQ = 8
HIDDEN = 32
NUM_HEADS = 2
HEAD_DIM = HIDDEN // NUM_HEADS
INTERMEDIATE = 64
NUM_LAYERS = 2
LN_EPS = 1e-12  # HF BERT default layer_norm_eps


# ------------------------------ in-kernel math --------------------------------
def _layernorm(x, gamma, beta):
    mean = jnp.mean(x, axis=-1, keepdims=True)
    var = jnp.mean((x - mean) ** 2, axis=-1, keepdims=True)
    return (x - mean) * lax.rsqrt(var + LN_EPS) * gamma + beta


def _gelu(x):
    # HF BERT uses exact (erf-based) GELU; kept fp32 for parity.
    return 0.5 * x * (1.0 + lax.erf(x * (1.0 / jnp.sqrt(2.0).astype(x.dtype))))


# ------------------------------- fused kernel ---------------------------------
def bert_fused_kernel(
    emb_ref, bias_ref, eg_ref, eb_ref,
    wq_ref, wk_ref, wv_ref, bq_ref, bk_ref, bv_ref,
    wo_ref, bo_ref, ln1g_ref, ln1b_ref,
    w1_ref, b1_ref, w2_ref, b2_ref, ln2g_ref, ln2b_ref,
    o_ref,
):
    B, S, H = o_ref.shape
    NH = NUM_HEADS
    HD = H // NH
    M = B * S

    # Embedding LayerNorm once; the (B*S, H) fp32 slab stays live for the whole
    # kernel (no HBM round trips between layers).
    # Dropout is identity in eval mode, intentionally omitted.
    x2 = _layernorm(emb_ref[...].astype(jnp.float32).reshape(M, H),
                    eg_ref[...], eb_ref[...])

    # Additive key-padding bias broadcast hoisted out of all loops.
    bias_b = jnp.broadcast_to(bias_ref[...], (B, S, S))
    scale = jnp.float32(1.0 / (HD ** 0.5))

    for l in range(NUM_LAYERS):                     # static 2-layer unroll
        xb = x2.astype(jnp.bfloat16)
        attn = jnp.zeros((M, H), jnp.float32)

        for h in range(NH):                         # static head loop, no lane slicing
            qh = (jnp.dot(xb, wq_ref[l, h], preferred_element_type=jnp.float32)
                  + bq_ref[l, h]).astype(jnp.bfloat16).reshape(B, S, HD)
            kh = (jnp.dot(xb, wk_ref[l, h], preferred_element_type=jnp.float32)
                  + bk_ref[l, h]).astype(jnp.bfloat16).reshape(B, S, HD)
            vh = (jnp.dot(xb, wv_ref[l, h], preferred_element_type=jnp.float32)
                  + bv_ref[l, h]).astype(jnp.bfloat16).reshape(B, S, HD)

            s = jnp.einsum('bqd,bkd->bqk', qh, kh,
                           preferred_element_type=jnp.float32) * scale + bias_b
            s = s - jnp.max(s, axis=-1, keepdims=True)
            p = jnp.exp(s)
            p = p * pl.reciprocal(jnp.sum(p, axis=-1, keepdims=True), approx=True)

            ch = jnp.einsum('bqk,bkd->bqd', p.astype(jnp.bfloat16), vh,
                            preferred_element_type=jnp.float32).reshape(M, HD)
            # Per-head output projection replaces the lane-offset concat.
            attn = attn + jnp.dot(ch.astype(jnp.bfloat16), wo_ref[l, h],
                                  preferred_element_type=jnp.float32)

        attn = attn + bo_ref[l]
        h1 = _layernorm(x2 + attn, ln1g_ref[l], ln1b_ref[l])

        # ---- FFN (exact GELU) + residual + LN2 ----
        ffn = jnp.dot(h1.astype(jnp.bfloat16), w1_ref[l],
                      preferred_element_type=jnp.float32) + b1_ref[l]
        ffn = _gelu(ffn)
        ffn = jnp.dot(ffn.astype(jnp.bfloat16), w2_ref[l],
                      preferred_element_type=jnp.float32) + b2_ref[l]
        x2 = _layernorm(h1 + ffn, ln2g_ref[l], ln2b_ref[l])

    o_ref[...] = x2.reshape(B, S, H)


# ------------------------------ kernel wrapper ---------------------------------
_LAYER_KEYS = ("wq", "wk", "wv", "bq", "bk", "bv",
               "wo", "bo", "ln1_g", "ln1_b",
               "w1", "b1", "w2", "b2", "ln2_g", "ln2_b")


def bert_backbone_pallas(emb, mask_bias, params):
    B, S, H = emb.shape
    L = params["wq"].shape[0]
    I = params["w1"].shape[2]
    NH, HD = NUM_HEADS, HEAD_DIM

    layer_arrays = [params[k] for k in _LAYER_KEYS]

    # Advisory cost estimate so XLA overlaps the embedding gathers with this call.
    flops_layer = (2 * B * S * H * (3 * H + H + 2 * I)
                   + 4 * B * NH * S * S * HD)
    flops = L * flops_layer + 10 * B * S * H
    transcendentals = L * (B * NH * S * S + B * S * I + 2 * B * S) + B * S
    bytes_accessed = (sum(int(a.size) * a.dtype.itemsize for a in layer_arrays)
                      + 2 * B * S * H * 4 + B * S * 4 + 2 * H * 4)
    cost = pl.CostEstimate(flops=int(flops),
                           transcendentals=int(transcendentals),
                           bytes_accessed=int(bytes_accessed))

    # Grid-less call: every operand is a single full-array VMEM block
    # (total footprint is a few tens of KiB), layers statically unrolled inside.
    return pl.pallas_call(
        bert_fused_kernel,
        out_shape=jax.ShapeDtypeStruct((B, S, H), jnp.float32),
        cost_estimate=cost,
    )(emb, mask_bias, params["emb_ln_g"], params["emb_ln_b"], *layer_arrays)


# --------------------------- parameter initialization --------------------------
def init_params(key):
    keys = iter(jax.random.split(key, 16))

    def n(shape, dtype=jnp.float32):
        return (0.02 * jax.random.normal(next(keys), shape)).astype(dtype)

    L, H, I, NH, HD = NUM_LAYERS, HIDDEN, INTERMEDIATE, NUM_HEADS, HEAD_DIM
    # Q/K/V/O weights are stored in the per-head split layout the kernel wants
    # (an HF checkpoint would be reshaped/transposed into this layout at load
    # time); matmul weights kept bf16 for the MXU fast path.
    return {
        "word_emb": n((VOCAB, H)),
        "pos_emb": n((MAX_POS, H)),
        "type_emb": n((TYPE_VOCAB, H)),
        "emb_ln_g": jnp.ones((1, H), jnp.float32),
        "emb_ln_b": jnp.zeros((1, H), jnp.float32),
        "wq": n((L, NH, H, HD), jnp.bfloat16),
        "wk": n((L, NH, H, HD), jnp.bfloat16),
        "wv": n((L, NH, H, HD), jnp.bfloat16),
        "bq": jnp.zeros((L, NH, 1, HD), jnp.float32),
        "bk": jnp.zeros((L, NH, 1, HD), jnp.float32),
        "bv": jnp.zeros((L, NH, 1, HD), jnp.float32),
        "wo": n((L, NH, HD, H), jnp.bfloat16),
        "bo": jnp.zeros((L, 1, H), jnp.float32),
        "ln1_g": jnp.ones((L, 1, H), jnp.float32),
        "ln1_b": jnp.zeros((L, 1, H), jnp.float32),
        "w1": n((L, H, I), jnp.bfloat16),
        "b1": jnp.zeros((L, 1, I), jnp.float32),
        "w2": n((L, I, H), jnp.bfloat16),
        "b2": jnp.zeros((L, 1, H), jnp.float32),
        "ln2_g": jnp.ones((L, 1, H), jnp.float32),
        "ln2_b": jnp.zeros((L, 1, H), jnp.float32),
    }


# --------------------------------- forward pass --------------------------------
@jax.jit
def bert_backbone_forward(params, input_ids, pad_mask):
    B, S = input_ids.shape
    # Embedding gathers kept in plain JAX glue (data-dependent gather).
    word = jnp.take(params["word_emb"], input_ids, axis=0)                # (B,S,H)
    pos = params["pos_emb"][:S][None, :, :]                               # (1,S,H)
    typ = params["type_emb"][0][None, None, :]                            # token_type_ids = 0
    emb = (word + pos + typ).astype(jnp.float32)

    # Additive attention bias precomputed once for all layers: 0 keep, -1e9 pad.
    mask_bias = (1.0 - pad_mask.astype(jnp.float32)).reshape(B, 1, S) * (-1e9)

    return bert_backbone_pallas(emb, mask_bias, params)   # last_hidden_state


def huggingface_bert_backbone(params, batch):
    # Mirrors: batch["backbone"] = model(input_ids=..., attention_mask=...).last_hidden_state
    batch = dict(batch)
    batch["backbone"] = bert_backbone_forward(
        params, batch["sequence_indices"], batch["pad_mask"]
    )
    return batch


# ------------------------------------ main -------------------------------------
if __name__ == "__main__":
    key = jax.random.PRNGKey(0)
    pkey, ikey = jax.random.split(key)
    params = init_params(pkey)

    input_ids = jax.random.randint(ikey, (BATCH, SEQ), 0, VOCAB, dtype=jnp.int32)
    # pad last 3 tokens of the second example
    pad_mask = jnp.ones((BATCH, SEQ), jnp.int32).at[1, SEQ - 3:].set(0)

    batch = {"sequence_indices": input_ids, "pad_mask": pad_mask}
    out = huggingface_bert_backbone(params, batch)
    hidden = jax.block_until_ready(out["backbone"])

    assert hidden.shape == (BATCH, SEQ, HIDDEN)
    assert hidden.dtype == jnp.float32
    assert bool(jnp.all(jnp.isfinite(hidden)))
    print("KERNEL_OK")
</pallas_src>

<mosaic_0001>
module attributes {stable_mosaic.version = 11 : i64} {
  func.func @bert_fused_kernel(%arg0: memref<2x8x32xf32, #tpu.memory_space<vmem>>, %arg1: memref<2x1x8xf32, #tpu.memory_space<vmem>>, %arg2: memref<1x32xf32, #tpu.memory_space<vmem>>, %arg3: memref<1x32xf32, #tpu.memory_space<vmem>>, %arg4: memref<2x2x32x16xbf16, #tpu.memory_space<vmem>>, %arg5: memref<2x2x32x16xbf16, #tpu.memory_space<vmem>>, %arg6: memref<2x2x32x16xbf16, #tpu.memory_space<vmem>>, %arg7: memref<2x2x1x16xf32, #tpu.memory_space<vmem>>, %arg8: memref<2x2x1x16xf32, #tpu.memory_space<vmem>>, %arg9: memref<2x2x1x16xf32, #tpu.memory_space<vmem>>, %arg10: memref<2x2x16x32xbf16, #tpu.memory_space<vmem>>, %arg11: memref<2x1x32xf32, #tpu.memory_space<vmem>>, %arg12: memref<2x1x32xf32, #tpu.memory_space<vmem>>, %arg13: memref<2x1x32xf32, #tpu.memory_space<vmem>>, %arg14: memref<2x32x64xbf16, #tpu.memory_space<vmem>>, %arg15: memref<2x1x64xf32, #tpu.memory_space<vmem>>, %arg16: memref<2x64x32xbf16, #tpu.memory_space<vmem>>, %arg17: memref<2x1x32xf32, #tpu.memory_space<vmem>>, %arg18: memref<2x1x32xf32, #tpu.memory_space<vmem>>, %arg19: memref<2x1x32xf32, #tpu.memory_space<vmem>>, %arg20: memref<2x8x32xf32, #tpu.memory_space<vmem>>) attributes {dimension_semantics = [], scalar_prefetch = 0 : i64, scratch_operands = 0 : i64, tpu.core_type = #tpu.core_type<tc>} {
    %c0 = arith.constant 0 : index
    %c0_0 = arith.constant 0 : index
    %c0_1 = arith.constant 0 : index
    %0 = vector.load %arg0[%c0, %c0_0, %c0_1] : memref<2x8x32xf32, #tpu.memory_space<vmem>>, vector<2x8x32xf32>
    %1 = vector.shape_cast %0 : vector<2x8x32xf32> to vector<16x32xf32>
    %c0_2 = arith.constant 0 : index
    %c0_3 = arith.constant 0 : index
    %2 = vector.load %arg2[%c0_2, %c0_3] : memref<1x32xf32, #tpu.memory_space<vmem>>, vector<1x32xf32>
    %c0_4 = arith.constant 0 : index
    %c0_5 = arith.constant 0 : index
    %3 = vector.load %arg3[%c0_4, %c0_5] : memref<1x32xf32, #tpu.memory_space<vmem>>, vector<1x32xf32>
    %cst = arith.constant dense<0.000000e+00> : vector<16xf32>
    %4 = vector.multi_reduction <add>, %1, %cst [1] : vector<16x32xf32> to vector<16xf32>
    %5 = vector.shape_cast %4 : vector<16xf32> to vector<16x1xf32>
    %cst_6 = arith.constant 3.200000e+01 : f32
    %6 = vector.broadcast %cst_6 : f32 to vector<16x1xf32>
    %7 = arith.divf %5, %6 : vector<16x1xf32>
    %8 = vector.broadcast %7 : vector<16x1xf32> to vector<16x32xf32>
    %9 = arith.subf %1, %8 : vector<16x32xf32>
    %10 = arith.mulf %9, %9 : vector<16x32xf32>
    %cst_7 = arith.constant dense<0.000000e+00> : vector<16xf32>
    %11 = vector.multi_reduction <add>, %10, %cst_7 [1] : vector<16x32xf32> to vector<16xf32>
    %12 = vector.shape_cast %11 : vector<16xf32> to vector<16x1xf32>
    %cst_8 = arith.constant 3.200000e+01 : f32
    %13 = vector.broadcast %cst_8 : f32 to vector<16x1xf32>
    %14 = arith.divf %12, %13 : vector<16x1xf32>
    %15 = vector.broadcast %7 : vector<16x1xf32> to vector<16x32xf32>
    %16 = arith.subf %1, %15 : vector<16x32xf32>
    %cst_9 = arith.constant 9.99999996E-13 : f32
    %17 = vector.broadcast %cst_9 : f32 to vector<16x1xf32>
    %18 = arith.addf %14, %17 : vector<16x1xf32>
    %19 = math.rsqrt %18 : vector<16x1xf32>
    %20 = vector.broadcast %19 : vector<16x1xf32> to vector<16x32xf32>
    %21 = arith.mulf %16, %20 : vector<16x32xf32>
    %22 = vector.broadcast %2 : vector<1x32xf32> to vector<16x32xf32>
    %23 = arith.mulf %21, %22 : vector<16x32xf32>
    %24 = vector.broadcast %3 : vector<1x32xf32> to vector<16x32xf32>
    %25 = arith.addf %23, %24 : vector<16x32xf32>
    %c0_10 = arith.constant 0 : index
    %c0_11 = arith.constant 0 : index
    %c0_12 = arith.constant 0 : index
    %26 = vector.load %arg1[%c0_10, %c0_11, %c0_12] : memref<2x1x8xf32, #tpu.memory_space<vmem>>, vector<2x1x8xf32>
    %27 = vector.shape_cast %26 : vector<2x1x8xf32> to vector<2x1x8xf32>
    %28 = vector.broadcast %27 : vector<2x1x8xf32> to vector<2x8x8xf32>
    %29 = arith.truncf %25 : vector<16x32xf32> to vector<16x32xbf16>
    %cst_13 = arith.constant 0.000000e+00 : f32
    %30 = vector.broadcast %cst_13 : f32 to vector<16x32xf32>
    %c0_14 = arith.constant 0 : index
    %c0_15 = arith.constant 0 : index
    %c0_16 = arith.constant 0 : index
    %c0_17 = arith.constant 0 : index
    %31 = vector.load %arg4[%c0_14, %c0_15, %c0_16, %c0_17] : memref<2x2x32x16xbf16, #tpu.memory_space<vmem>>, vector<1x1x32x16xbf16>
    %32 = vector.shape_cast %31 : vector<1x1x32x16xbf16> to vector<32x16xbf16>
    %cst_18 = arith.constant dense<0.000000e+00> : vector<16x16xf32>
    %33 = tpu.matmul %29, %32, %cst_18 {dimension_numbers = #tpu.dot_dimension_numbers<[1], [0], [0], [1], [0, 0, 1, 1], [], []>} : vector<16x32xbf16>, vector<32x16xbf16>, vector<16x16xf32> -> vector<16x16xf32>
    %c0_19 = arith.constant 0 : index
    %c0_20 = arith.constant 0 : index
    %c0_21 = arith.constant 0 : index
    %c0_22 = arith.constant 0 : index
    %34 = vector.load %arg7[%c0_19, %c0_20, %c0_21, %c0_22] : memref<2x2x1x16xf32, #tpu.memory_space<vmem>>, vector<1x1x1x16xf32>
    %35 = vector.shape_cast %34 : vector<1x1x1x16xf32> to vector<1x16xf32>
    %36 = vector.broadcast %35 : vector<1x16xf32> to vector<16x16xf32>
    %37 = arith.addf %33, %36 : vector<16x16xf32>
    %38 = arith.truncf %37 : vector<16x16xf32> to vector<16x16xbf16>
    %39 = vector.shape_cast %38 : vector<16x16xbf16> to vector<2x8x16xbf16>
    %c0_23 = arith.constant 0 : index
    %c0_24 = arith.constant 0 : index
    %c0_25 = arith.constant 0 : index
    %c0_26 = arith.constant 0 : index
    %40 = vector.load %arg5[%c0_23, %c0_24, %c0_25, %c0_26] : memref<2x2x32x16xbf16, #tpu.memory_space<vmem>>, vector<1x1x32x16xbf16>
    %41 = vector.shape_cast %40 : vector<1x1x32x16xbf16> to vector<32x16xbf16>
    %cst_27 = arith.constant dense<0.000000e+00> : vector<16x16xf32>
    %42 = tpu.matmul %29, %41, %cst_27 {dimension_numbers = #tpu.dot_dimension_numbers<[1], [0], [0], [1], [0, 0, 1, 1], [], []>} : vector<16x32xbf16>, vector<32x16xbf16>, vector<16x16xf32> -> vector<16x16xf32>
    %c0_28 = arith.constant 0 : index
    %c0_29 = arith.constant 0 : index
    %c0_30 = arith.constant 0 : index
    %c0_31 = arith.constant 0 : index
    %43 = vector.load %arg8[%c0_28, %c0_29, %c0_30, %c0_31] : memref<2x2x1x16xf32, #tpu.memory_space<vmem>>, vector<1x1x1x16xf32>
    %44 = vector.shape_cast %43 : vector<1x1x1x16xf32> to vector<1x16xf32>
    %45 = vector.broadcast %44 : vector<1x16xf32> to vector<16x16xf32>
    %46 = arith.addf %42, %45 : vector<16x16xf32>
    %47 = arith.truncf %46 : vector<16x16xf32> to vector<16x16xbf16>
    %48 = vector.shape_cast %47 : vector<16x16xbf16> to vector<2x8x16xbf16>
    %c0_32 = arith.constant 0 : index
    %c0_33 = arith.constant 0 : index
    %c0_34 = arith.constant 0 : index
    %c0_35 = arith.constant 0 : index
    %49 = vector.load %arg6[%c0_32, %c0_33, %c0_34, %c0_35] : memref<2x2x32x16xbf16, #tpu.memory_space<vmem>>, vector<1x1x32x16xbf16>
    %50 = vector.shape_cast %49 : vector<1x1x32x16xbf16> to vector<32x16xbf16>
    %cst_36 = arith.constant dense<0.000000e+00> : vector<16x16xf32>
    %51 = tpu.matmul %29, %50, %cst_36 {dimension_numbers = #tpu.dot_dimension_numbers<[1], [0], [0], [1], [0, 0, 1, 1], [], []>} : vector<16x32xbf16>, vector<32x16xbf16>, vector<16x16xf32> -> vector<16x16xf32>
    %c0_37 = arith.constant 0 : index
    %c0_38 = arith.constant 0 : index
    %c0_39 = arith.constant 0 : index
    %c0_40 = arith.constant 0 : index
    %52 = vector.load %arg9[%c0_37, %c0_38, %c0_39, %c0_40] : memref<2x2x1x16xf32, #tpu.memory_space<vmem>>, vector<1x1x1x16xf32>
    %53 = vector.shape_cast %52 : vector<1x1x1x16xf32> to vector<1x16xf32>
    %54 = vector.broadcast %53 : vector<1x16xf32> to vector<16x16xf32>
    %55 = arith.addf %51, %54 : vector<16x16xf32>
    %56 = arith.truncf %55 : vector<16x16xf32> to vector<16x16xbf16>
    %57 = vector.shape_cast %56 : vector<16x16xbf16> to vector<2x8x16xbf16>
    "tpu.trace_start"() <{level = 10 : i32, message = "bqd,bkd->bqk"}> : () -> ()
    %cst_41 = arith.constant dense<0.000000e+00> : vector<2x8x8xf32>
    %58 = tpu.matmul %39, %48, %cst_41 {dimension_numbers = #tpu.dot_dimension_numbers<[2], [2], [1], [1], [0, 0, 0, 1, 1, 1], [0], [0]>} : vector<2x8x16xbf16>, vector<2x8x16xbf16>, vector<2x8x8xf32> -> vector<2x8x8xf32>
    "tpu.trace_stop"() : () -> ()
    %cst_42 = arith.constant 2.500000e-01 : f32
    %59 = vector.broadcast %cst_42 : f32 to vector<2x8x8xf32>
    %60 = arith.mulf %58, %59 : vector<2x8x8xf32>
    %61 = arith.addf %60, %28 : vector<2x8x8xf32>
    %cst_43 = arith.constant dense<0xFF800000> : vector<2x8xf32>
    %62 = vector.multi_reduction <maximumf>, %61, %cst_43 [2] : vector<2x8x8xf32> to vector<2x8xf32>
    %63 = vector.shape_cast %62 : vector<2x8xf32> to vector<2x8x1xf32>
    %64 = vector.broadcast %63 : vector<2x8x1xf32> to vector<2x8x8xf32>
    %65 = arith.subf %61, %64 : vector<2x8x8xf32>
    %66 = math.exp %65 : vector<2x8x8xf32>
    %cst_44 = arith.constant dense<0.000000e+00> : vector<2x8xf32>
    %67 = vector.multi_reduction <add>, %66, %cst_44 [2] : vector<2x8x8xf32> to vector<2x8xf32>
    %68 = vector.shape_cast %67 : vector<2x8xf32> to vector<2x8x1xf32>
    %69 = tpu.reciprocal %68 {approx = true} : vector<2x8x1xf32> -> vector<2x8x1xf32>
    %70 = vector.broadcast %69 : vector<2x8x1xf32> to vector<2x8x8xf32>
    %71 = arith.mulf %66, %70 : vector<2x8x8xf32>
    %72 = arith.truncf %71 : vector<2x8x8xf32> to vector<2x8x8xbf16>
    "tpu.trace_start"() <{level = 10 : i32, message = "bqk,bkd->bqd"}> : () -> ()
    %cst_45 = arith.constant dense<0.000000e+00> : vector<2x8x16xf32>
    %73 = tpu.matmul %72, %57, %cst_45 {dimension_numbers = #tpu.dot_dimension_numbers<[2], [1], [1], [2], [0, 0, 0, 1, 1, 2], [0], [0]>} : vector<2x8x8xbf16>, vector<2x8x16xbf16>, vector<2x8x16xf32> -> vector<2x8x16xf32>
    "tpu.trace_stop"() : () -> ()
    %74 = vector.shape_cast %73 : vector<2x8x16xf32> to vector<16x16xf32>
    %75 = arith.truncf %74 : vector<16x16xf32> to vector<16x16xbf16>
    %c0_46 = arith.constant 0 : index
    %c0_47 = arith.constant 0 : index
    %c0_48 = arith.constant 0 : index
    %c0_49 = arith.constant 0 : index
    %76 = vector.load %arg10[%c0_46, %c0_47, %c0_48, %c0_49] : memref<2x2x16x32xbf16, #tpu.memory_space<vmem>>, vector<1x1x16x32xbf16>
    %77 = vector.shape_cast %76 : vector<1x1x16x32xbf16> to vector<16x32xbf16>
    %cst_50 = arith.constant dense<0.000000e+00> : vector<16x32xf32>
    %78 = tpu.matmul %75, %77, %cst_50 {dimension_numbers = #tpu.dot_dimension_numbers<[1], [0], [0], [1], [0, 0, 1, 1], [], []>} : vector<16x16xbf16>, vector<16x32xbf16>, vector<16x32xf32> -> vector<16x32xf32>
    %79 = arith.addf %30, %78 : vector<16x32xf32>
    %c0_51 = arith.constant 0 : index
    %c1 = arith.constant 1 : index
    %c0_52 = arith.constant 0 : index
    %c0_53 = arith.constant 0 : index
    %80 = vector.load %arg4[%c0_51, %c1, %c0_52, %c0_53] : memref<2x2x32x16xbf16, #tpu.memory_space<vmem>>, vector<1x1x32x16xbf16>
    %81 = vector.shape_cast %80 : vector<1x1x32x16xbf16> to vector<32x16xbf16>
    %cst_54 = arith.constant dense<0.000000e+00> : vector<16x16xf32>
    %82 = tpu.matmul %29, %81, %cst_54 {dimension_numbers = #tpu.dot_dimension_numbers<[1], [0], [0], [1], [0, 0, 1, 1], [], []>} : vector<16x32xbf16>, vector<32x16xbf16>, vector<16x16xf32> -> vector<16x16xf32>
    %c0_55 = arith.constant 0 : index
    %c1_56 = arith.constant 1 : index
    %c0_57 = arith.constant 0 : index
    %c0_58 = arith.constant 0 : index
    %83 = vector.load %arg7[%c0_55, %c1_56, %c0_57, %c0_58] : memref<2x2x1x16xf32, #tpu.memory_space<vmem>>, vector<1x1x1x16xf32>
    %84 = vector.shape_cast %83 : vector<1x1x1x16xf32> to vector<1x16xf32>
    %85 = vector.broadcast %84 : vector<1x16xf32> to vector<16x16xf32>
    %86 = arith.addf %82, %85 : vector<16x16xf32>
    %87 = arith.truncf %86 : vector<16x16xf32> to vector<16x16xbf16>
    %88 = vector.shape_cast %87 : vector<16x16xbf16> to vector<2x8x16xbf16>
    %c0_59 = arith.constant 0 : index
    %c1_60 = arith.constant 1 : index
    %c0_61 = arith.constant 0 : index
    %c0_62 = arith.constant 0 : index
    %89 = vector.load %arg5[%c0_59, %c1_60, %c0_61, %c0_62] : memref<2x2x32x16xbf16, #tpu.memory_space<vmem>>, vector<1x1x32x16xbf16>
    %90 = vector.shape_cast %89 : vector<1x1x32x16xbf16> to vector<32x16xbf16>
    %cst_63 = arith.constant dense<0.000000e+00> : vector<16x16xf32>
    %91 = tpu.matmul %29, %90, %cst_63 {dimension_numbers = #tpu.dot_dimension_numbers<[1], [0], [0], [1], [0, 0, 1, 1], [], []>} : vector<16x32xbf16>, vector<32x16xbf16>, vector<16x16xf32> -> vector<16x16xf32>
    %c0_64 = arith.constant 0 : index
    %c1_65 = arith.constant 1 : index
    %c0_66 = arith.constant 0 : index
    %c0_67 = arith.constant 0 : index
    %92 = vector.load %arg8[%c0_64, %c1_65, %c0_66, %c0_67] : memref<2x2x1x16xf32, #tpu.memory_space<vmem>>, vector<1x1x1x16xf32>
    %93 = vector.shape_cast %92 : vector<1x1x1x16xf32> to vector<1x16xf32>
    %94 = vector.broadcast %93 : vector<1x16xf32> to vector<16x16xf32>
    %95 = arith.addf %91, %94 : vector<16x16xf32>
    %96 = arith.truncf %95 : vector<16x16xf32> to vector<16x16xbf16>
    %97 = vector.shape_cast %96 : vector<16x16xbf16> to vector<2x8x16xbf16>
    %c0_68 = arith.constant 0 : index
    %c1_69 = arith.constant 1 : index
    %c0_70 = arith.constant 0 : index
    %c0_71 = arith.constant 0 : index
    %98 = vector.load %arg6[%c0_68, %c1_69, %c0_70, %c0_71] : memref<2x2x32x16xbf16, #tpu.memory_space<vmem>>, vector<1x1x32x16xbf16>
    %99 = vector.shape_cast %98 : vector<1x1x32x16xbf16> to vector<32x16xbf16>
    %cst_72 = arith.constant dense<0.000000e+00> : vector<16x16xf32>
    %100 = tpu.matmul %29, %99, %cst_72 {dimension_numbers = #tpu.dot_dimension_numbers<[1], [0], [0], [1], [0, 0, 1, 1], [], []>} : vector<16x32xbf16>, vector<32x16xbf16>, vector<16x16xf32> -> vector<16x16xf32>
    %c0_73 = arith.constant 0 : index
    %c1_74 = arith.constant 1 : index
    %c0_75 = arith.constant 0 : index
    %c0_76 = arith.constant 0 : index
    %101 = vector.load %arg9[%c0_73, %c1_74, %c0_75, %c0_76] : memref<2x2x1x16xf32, #tpu.memory_space<vmem>>, vector<1x1x1x16xf32>
    %102 = vector.shape_cast %101 : vector<1x1x1x16xf32> to vector<1x16xf32>
    %103 = vector.broadcast %102 : vector<1x16xf32> to vector<16x16xf32>
    %104 = arith.addf %100, %103 : vector<16x16xf32>
    %105 = arith.truncf %104 : vector<16x16xf32> to vector<16x16xbf16>
    %106 = vector.shape_cast %105 : vector<16x16xbf16> to vector<2x8x16xbf16>
    "tpu.trace_start"() <{level = 10 : i32, message = "bqd,bkd->bqk"}> : () -> ()
    %cst_77 = arith.constant dense<0.000000e+00> : vector<2x8x8xf32>
    %107 = tpu.matmul %88, %97, %cst_77 {dimension_numbers = #tpu.dot_dimension_numbers<[2], [2], [1], [1], [0, 0, 0, 1, 1, 1], [0], [0]>} : vector<2x8x16xbf16>, vector<2x8x16xbf16>, vector<2x8x8xf32> -> vector<2x8x8xf32>
    "tpu.trace_stop"() : () -> ()
    %cst_78 = arith.constant 2.500000e-01 : f32
    %108 = vector.broadcast %cst_78 : f32 to vector<2x8x8xf32>
    %109 = arith.mulf %107, %108 : vector<2x8x8xf32>
    %110 = arith.addf %109, %28 : vector<2x8x8xf32>
    %cst_79 = arith.constant dense<0xFF800000> : vector<2x8xf32>
    %111 = vector.multi_reduction <maximumf>, %110, %cst_79 [2] : vector<2x8x8xf32> to vector<2x8xf32>
    %112 = vector.shape_cast %111 : vector<2x8xf32> to vector<2x8x1xf32>
    %113 = vector.broadcast %112 : vector<2x8x1xf32> to vector<2x8x8xf32>
    %114 = arith.subf %110, %113 : vector<2x8x8xf32>
    %115 = math.exp %114 : vector<2x8x8xf32>
    %cst_80 = arith.constant dense<0.000000e+00> : vector<2x8xf32>
    %116 = vector.multi_reduction <add>, %115, %cst_80 [2] : vector<2x8x8xf32> to vector<2x8xf32>
    %117 = vector.shape_cast %116 : vector<2x8xf32> to vector<2x8x1xf32>
    %118 = tpu.reciprocal %117 {approx = true} : vector<2x8x1xf32> -> vector<2x8x1xf32>
    %119 = vector.broadcast %118 : vector<2x8x1xf32> to vector<2x8x8xf32>
    %120 = arith.mulf %115, %119 : vector<2x8x8xf32>
    %121 = arith.truncf %120 : vector<2x8x8xf32> to vector<2x8x8xbf16>
    "tpu.trace_start"() <{level = 10 : i32, message = "bqk,bkd->bqd"}> : () -> ()
    %cst_81 = arith.constant dense<0.000000e+00> : vector<2x8x16xf32>
    %122 = tpu.matmul %121, %106, %cst_81 {dimension_numbers = #tpu.dot_dimension_numbers<[2], [1], [1], [2], [0, 0, 0, 1, 1, 2], [0], [0]>} : vector<2x8x8xbf16>, vector<2x8x16xbf16>, vector<2x8x16xf32> -> vector<2x8x16xf32>
    "tpu.trace_stop"() : () -> ()
    %123 = vector.shape_cast %122 : vector<2x8x16xf32> to vector<16x16xf32>
    %124 = arith.truncf %123 : vector<16x16xf32> to vector<16x16xbf16>
    %c0_82 = arith.constant 0 : index
    %c1_83 = arith.constant 1 : index
    %c0_84 = arith.constant 0 : index
    %c0_85 = arith.constant 0 : index
    %125 = vector.load %arg10[%c0_82, %c1_83, %c0_84, %c0_85] : memref<2x2x16x32xbf16, #tpu.memory_space<vmem>>, vector<1x1x16x32xbf16>
    %126 = vector.shape_cast %125 : vector<1x1x16x32xbf16> to vector<16x32xbf16>
    %cst_86 = arith.constant dense<0.000000e+00> : vector<16x32xf32>
    %127 = tpu.matmul %124, %126, %cst_86 {dimension_numbers = #tpu.dot_dimension_numbers<[1], [0], [0], [1], [0, 0, 1, 1], [], []>} : vector<16x16xbf16>, vector<16x32xbf16>, vector<16x32xf32> -> vector<16x32xf32>
    %128 = arith.addf %79, %127 : vector<16x32xf32>
    %c0_87 = arith.constant 0 : index
    %c0_88 = arith.constant 0 : index
    %c0_89 = arith.constant 0 : index
    %129 = vector.load %arg11[%c0_87, %c0_88, %c0_89] : memref<2x1x32xf32, #tpu.memory_space<vmem>>, vector<1x1x32xf32>
    %130 = vector.shape_cast %129 : vector<1x1x32xf32> to vector<1x32xf32>
    %131 = vector.broadcast %130 : vector<1x32xf32> to vector<16x32xf32>
    %132 = arith.addf %128, %131 : vector<16x32xf32>
    %133 = arith.addf %25, %132 : vector<16x32xf32>
    %c0_90 = arith.constant 0 : index
    %c0_91 = arith.constant 0 : index
    %c0_92 = arith.constant 0 : index
    %134 = vector.load %arg12[%c0_90, %c0_91, %c0_92] : memref<2x1x32xf32, #tpu.memory_space<vmem>>, vector<1x1x32xf32>
    %135 = vector.shape_cast %134 : vector<1x1x32xf32> to vector<1x32xf32>
    %c0_93 = arith.constant 0 : index
    %c0_94 = arith.constant 0 : index
    %c0_95 = arith.constant 0 : index
    %136 = vector.load %arg13[%c0_93, %c0_94, %c0_95] : memref<2x1x32xf32, #tpu.memory_space<vmem>>, vector<1x1x32xf32>
    %137 = vector.shape_cast %136 : vector<1x1x32xf32> to vector<1x32xf32>
    %cst_96 = arith.constant dense<0.000000e+00> : vector<16xf32>
    %138 = vector.multi_reduction <add>, %133, %cst_96 [1] : vector<16x32xf32> to vector<16xf32>
    %139 = vector.shape_cast %138 : vector<16xf32> to vector<16x1xf32>
    %cst_97 = arith.constant 3.200000e+01 : f32
    %140 = vector.broadcast %cst_97 : f32 to vector<16x1xf32>
    %141 = arith.divf %139, %140 : vector<16x1xf32>
    %142 = vector.broadcast %141 : vector<16x1xf32> to vector<16x32xf32>
    %143 = arith.subf %133, %142 : vector<16x32xf32>
    %144 = arith.mulf %143, %143 : vector<16x32xf32>
    %cst_98 = arith.constant dense<0.000000e+00> : vector<16xf32>
    %145 = vector.multi_reduction <add>, %144, %cst_98 [1] : vector<16x32xf32> to vector<16xf32>
    %146 = vector.shape_cast %145 : vector<16xf32> to vector<16x1xf32>
    %cst_99 = arith.constant 3.200000e+01 : f32
    %147 = vector.broadcast %cst_99 : f32 to vector<16x1xf32>
    %148 = arith.divf %146, %147 : vector<16x1xf32>
    %149 = vector.broadcast %141 : vector<16x1xf32> to vector<16x32xf32>
    %150 = arith.subf %133, %149 : vector<16x32xf32>
    %cst_100 = arith.constant 9.99999996E-13 : f32
    %151 = vector.broadcast %cst_100 : f32 to vector<16x1xf32>
    %152 = arith.addf %148, %151 : vector<16x1xf32>
    %153 = math.rsqrt %152 : vector<16x1xf32>
    %154 = vector.broadcast %153 : vector<16x1xf32> to vector<16x32xf32>
    %155 = arith.mulf %150, %154 : vector<16x32xf32>
    %156 = vector.broadcast %135 : vector<1x32xf32> to vector<16x32xf32>
    %157 = arith.mulf %155, %156 : vector<16x32xf32>
    %158 = vector.broadcast %137 : vector<1x32xf32> to vector<16x32xf32>
    %159 = arith.addf %157, %158 : vector<16x32xf32>
    %160 = arith.truncf %159 : vector<16x32xf32> to vector<16x32xbf16>
    %c0_101 = arith.constant 0 : index
    %c0_102 = arith.constant 0 : index
    %c0_103 = arith.constant 0 : index
    %161 = vector.load %arg14[%c0_101, %c0_102, %c0_103] : memref<2x32x64xbf16, #tpu.memory_space<vmem>>, vector<1x32x64xbf16>
    %162 = vector.shape_cast %161 : vector<1x32x64xbf16> to vector<32x64xbf16>
    %cst_104 = arith.constant dense<0.000000e+00> : vector<16x64xf32>
    %163 = tpu.matmul %160, %162, %cst_104 {dimension_numbers = #tpu.dot_dimension_numbers<[1], [0], [0], [1], [0, 0, 1, 1], [], []>} : vector<16x32xbf16>, vector<32x64xbf16>, vector<16x64xf32> -> vector<16x64xf32>
    %c0_105 = arith.constant 0 : index
    %c0_106 = arith.constant 0 : index
    %c0_107 = arith.constant 0 : index
    %164 = vector.load %arg15[%c0_105, %c0_106, %c0_107] : memref<2x1x64xf32, #tpu.memory_space<vmem>>, vector<1x1x64xf32>
    %165 = vector.shape_cast %164 : vector<1x1x64xf32> to vector<1x64xf32>
    %166 = vector.broadcast %165 : vector<1x64xf32> to vector<16x64xf32>
    %167 = arith.addf %163, %166 : vector<16x64xf32>
    %cst_108 = arith.constant 5.000000e-01 : f32
    %168 = vector.broadcast %cst_108 : f32 to vector<16x64xf32>
    %169 = arith.mulf %168, %167 : vector<16x64xf32>
    %cst_109 = arith.constant 2.000000e+00 : f32
    %170 = math.sqrt %cst_109 : f32
    %cst_110 = arith.constant 1.000000e+00 : f32
    %171 = arith.divf %cst_110, %170 : f32
    %172 = vector.broadcast %171 : f32 to vector<16x64xf32>
    %173 = arith.mulf %167, %172 : vector<16x64xf32>
    %174 = math.erf %173 : vector<16x64xf32>
    %cst_111 = arith.constant 1.000000e+00 : f32
    %175 = vector.broadcast %cst_111 : f32 to vector<16x64xf32>
    %176 = arith.addf %175, %174 : vector<16x64xf32>
    %177 = arith.mulf %169, %176 : vector<16x64xf32>
    %178 = arith.truncf %177 : vector<16x64xf32> to vector<16x64xbf16>
    %c0_112 = arith.constant 0 : index
    %c0_113 = arith.constant 0 : index
    %c0_114 = arith.constant 0 : index
    %179 = vector.load %arg16[%c0_112, %c0_113, %c0_114] : memref<2x64x32xbf16, #tpu.memory_space<vmem>>, vector<1x64x32xbf16>
    %180 = vector.shape_cast %179 : vector<1x64x32xbf16> to vector<64x32xbf16>
    %cst_115 = arith.constant dense<0.000000e+00> : vector<16x32xf32>
    %181 = tpu.matmul %178, %180, %cst_115 {dimension_numbers = #tpu.dot_dimension_numbers<[1], [0], [0], [1], [0, 0, 1, 1], [], []>} : vector<16x64xbf16>, vector<64x32xbf16>, vector<16x32xf32> -> vector<16x32xf32>
    %c0_116 = arith.constant 0 : index
    %c0_117 = arith.constant 0 : index
    %c0_118 = arith.constant 0 : index
    %182 = vector.load %arg17[%c0_116, %c0_117, %c0_118] : memref<2x1x32xf32, #tpu.memory_space<vmem>>, vector<1x1x32xf32>
    %183 = vector.shape_cast %182 : vector<1x1x32xf32> to vector<1x32xf32>
    %184 = vector.broadcast %183 : vector<1x32xf32> to vector<16x32xf32>
    %185 = arith.addf %181, %184 : vector<16x32xf32>
    %186 = arith.addf %159, %185 : vector<16x32xf32>
    %c0_119 = arith.constant 0 : index
    %c0_120 = arith.constant 0 : index
    %c0_121 = arith.constant 0 : index
    %187 = vector.load %arg18[%c0_119, %c0_120, %c0_121] : memref<2x1x32xf32, #tpu.memory_space<vmem>>, vector<1x1x32xf32>
    %188 = vector.shape_cast %187 : vector<1x1x32xf32> to vector<1x32xf32>
    %c0_122 = arith.constant 0 : index
    %c0_123 = arith.constant 0 : index
    %c0_124 = arith.constant 0 : index
    %189 = vector.load %arg19[%c0_122, %c0_123, %c0_124] : memref<2x1x32xf32, #tpu.memory_space<vmem>>, vector<1x1x32xf32>
    %190 = vector.shape_cast %189 : vector<1x1x32xf32> to vector<1x32xf32>
    %cst_125 = arith.constant dense<0.000000e+00> : vector<16xf32>
    %191 = vector.multi_reduction <add>, %186, %cst_125 [1] : vector<16x32xf32> to vector<16xf32>
    %192 = vector.shape_cast %191 : vector<16xf32> to vector<16x1xf32>
    %cst_126 = arith.constant 3.200000e+01 : f32
    %193 = vector.broadcast %cst_126 : f32 to vector<16x1xf32>
    %194 = arith.divf %192, %193 : vector<16x1xf32>
    %195 = vector.broadcast %194 : vector<16x1xf32> to vector<16x32xf32>
    %196 = arith.subf %186, %195 : vector<16x32xf32>
    %197 = arith.mulf %196, %196 : vector<16x32xf32>
    %cst_127 = arith.constant dense<0.000000e+00> : vector<16xf32>
    %198 = vector.multi_reduction <add>, %197, %cst_127 [1] : vector<16x32xf32> to vector<16xf32>
    %199 = vector.shape_cast %198 : vector<16xf32> to vector<16x1xf32>
    %cst_128 = arith.constant 3.200000e+01 : f32
    %200 = vector.broadcast %cst_128 : f32 to vector<16x1xf32>
    %201 = arith.divf %199, %200 : vector<16x1xf32>
    %202 = vector.broadcast %194 : vector<16x1xf32> to vector<16x32xf32>
    %203 = arith.subf %186, %202 : vector<16x32xf32>
    %cst_129 = arith.constant 9.99999996E-13 : f32
    %204 = vector.broadcast %cst_129 : f32 to vector<16x1xf32>
    %205 = arith.addf %201, %204 : vector<16x1xf32>
    %206 = math.rsqrt %205 : vector<16x1xf32>
    %207 = vector.broadcast %206 : vector<16x1xf32> to vector<16x32xf32>
    %208 = arith.mulf %203, %207 : vector<16x32xf32>
    %209 = vector.broadcast %188 : vector<1x32xf32> to vector<16x32xf32>
    %210 = arith.mulf %208, %209 : vector<16x32xf32>
    %211 = vector.broadcast %190 : vector<1x32xf32> to vector<16x32xf32>
    %212 = arith.addf %210, %211 : vector<16x32xf32>
    %213 = arith.truncf %212 : vector<16x32xf32> to vector<16x32xbf16>
    %cst_130 = arith.constant 0.000000e+00 : f32
    %214 = vector.broadcast %cst_130 : f32 to vector<16x32xf32>
    %c1_131 = arith.constant 1 : index
    %c0_132 = arith.constant 0 : index
    %c0_133 = arith.constant 0 : index
    %c0_134 = arith.constant 0 : index
    %215 = vector.load %arg4[%c1_131, %c0_132, %c0_133, %c0_134] : memref<2x2x32x16xbf16, #tpu.memory_space<vmem>>, vector<1x1x32x16xbf16>
    %216 = vector.shape_cast %215 : vector<1x1x32x16xbf16> to vector<32x16xbf16>
    %cst_135 = arith.constant dense<0.000000e+00> : vector<16x16xf32>
    %217 = tpu.matmul %213, %216, %cst_135 {dimension_numbers = #tpu.dot_dimension_numbers<[1], [0], [0], [1], [0, 0, 1, 1], [], []>} : vector<16x32xbf16>, vector<32x16xbf16>, vector<16x16xf32> -> vector<16x16xf32>
    %c1_136 = arith.constant 1 : index
    %c0_137 = arith.constant 0 : index
    %c0_138 = arith.constant 0 : index
    %c0_139 = arith.constant 0 : index
    %218 = vector.load %arg7[%c1_136, %c0_137, %c0_138, %c0_139] : memref<2x2x1x16xf32, #tpu.memory_space<vmem>>, vector<1x1x1x16xf32>
    %219 = vector.shape_cast %218 : vector<1x1x1x16xf32> to vector<1x16xf32>
    %220 = vector.broadcast %219 : vector<1x16xf32> to vector<16x16xf32>
    %221 = arith.addf %217, %220 : vector<16x16xf32>
    %222 = arith.truncf %221 : vector<16x16xf32> to vector<16x16xbf16>
    %223 = vector.shape_cast %222 : vector<16x16xbf16> to vector<2x8x16xbf16>
    %c1_140 = arith.constant 1 : index
    %c0_141 = arith.constant 0 : index
    %c0_142 = arith.constant 0 : index
    %c0_143 = arith.constant 0 : index
    %224 = vector.load %arg5[%c1_140, %c0_141, %c0_142, %c0_143] : memref<2x2x32x16xbf16, #tpu.memory_space<vmem>>, vector<1x1x32x16xbf16>
    %225 = vector.shape_cast %224 : vector<1x1x32x16xbf16> to vector<32x16xbf16>
    %cst_144 = arith.constant dense<0.000000e+00> : vector<16x16xf32>
    %226 = tpu.matmul %213, %225, %cst_144 {dimension_numbers = #tpu.dot_dimension_numbers<[1], [0], [0], [1], [0, 0, 1, 1], [], []>} : vector<16x32xbf16>, vector<32x16xbf16>, vector<16x16xf32> -> vector<16x16xf32>
    %c1_145 = arith.constant 1 : index
    %c0_146 = arith.constant 0 : index
    %c0_147 = arith.constant 0 : index
    %c0_148 = arith.constant 0 : index
    %227 = vector.load %arg8[%c1_145, %c0_146, %c0_147, %c0_148] : memref<2x2x1x16xf32, #tpu.memory_space<vmem>>, vector<1x1x1x16xf32>
    %228 = vector.shape_cast %227 : vector<1x1x1x16xf32> to vector<1x16xf32>
    %229 = vector.broadcast %228 : vector<1x16xf32> to vector<16x16xf32>
    %230 = arith.addf %226, %229 : vector<16x16xf32>
    %231 = arith.truncf %230 : vector<16x16xf32> to vector<16x16xbf16>
    %232 = vector.shape_cast %231 : vector<16x16xbf16> to vector<2x8x16xbf16>
    %c1_149 = arith.constant 1 : index
    %c0_150 = arith.constant 0 : index
    %c0_151 = arith.constant 0 : index
    %c0_152 = arith.constant 0 : index
    %233 = vector.load %arg6[%c1_149, %c0_150, %c0_151, %c0_152] : memref<2x2x32x16xbf16, #tpu.memory_space<vmem>>, vector<1x1x32x16xbf16>
    %234 = vector.shape_cast %233 : vector<1x1x32x16xbf16> to vector<32x16xbf16>
    %cst_153 = arith.constant dense<0.000000e+00> : vector<16x16xf32>
    %235 = tpu.matmul %213, %234, %cst_153 {dimension_numbers = #tpu.dot_dimension_numbers<[1], [0], [0], [1], [0, 0, 1, 1], [], []>} : vector<16x32xbf16>, vector<32x16xbf16>, vector<16x16xf32> -> vector<16x16xf32>
    %c1_154 = arith.constant 1 : index
    %c0_155 = arith.constant 0 : index
    %c0_156 = arith.constant 0 : index
    %c0_157 = arith.constant 0 : index
    %236 = vector.load %arg9[%c1_154, %c0_155, %c0_156, %c0_157] : memref<2x2x1x16xf32, #tpu.memory_space<vmem>>, vector<1x1x1x16xf32>
    %237 = vector.shape_cast %236 : vector<1x1x1x16xf32> to vector<1x16xf32>
    %238 = vector.broadcast %237 : vector<1x16xf32> to vector<16x16xf32>
    %239 = arith.addf %235, %238 : vector<16x16xf32>
    %240 = arith.truncf %239 : vector<16x16xf32> to vector<16x16xbf16>
    %241 = vector.shape_cast %240 : vector<16x16xbf16> to vector<2x8x16xbf16>
    "tpu.trace_start"() <{level = 10 : i32, message = "bqd,bkd->bqk"}> : () -> ()
    %cst_158 = arith.constant dense<0.000000e+00> : vector<2x8x8xf32>
    %242 = tpu.matmul %223, %232, %cst_158 {dimension_numbers = #tpu.dot_dimension_numbers<[2], [2], [1], [1], [0, 0, 0, 1, 1, 1], [0], [0]>} : vector<2x8x16xbf16>, vector<2x8x16xbf16>, vector<2x8x8xf32> -> vector<2x8x8xf32>
    "tpu.trace_stop"() : () -> ()
    %cst_159 = arith.constant 2.500000e-01 : f32
    %243 = vector.broadcast %cst_159 : f32 to vector<2x8x8xf32>
    %244 = arith.mulf %242, %243 : vector<2x8x8xf32>
    %245 = arith.addf %244, %28 : vector<2x8x8xf32>
    %cst_160 = arith.constant dense<0xFF800000> : vector<2x8xf32>
    %246 = vector.multi_reduction <maximumf>, %245, %cst_160 [2] : vector<2x8x8xf32> to vector<2x8xf32>
    %247 = vector.shape_cast %246 : vector<2x8xf32> to vector<2x8x1xf32>
    %248 = vector.broadcast %247 : vector<2x8x1xf32> to vector<2x8x8xf32>
    %249 = arith.subf %245, %248 : vector<2x8x8xf32>
    %250 = math.exp %249 : vector<2x8x8xf32>
    %cst_161 = arith.constant dense<0.000000e+00> : vector<2x8xf32>
    %251 = vector.multi_reduction <add>, %250, %cst_161 [2] : vector<2x8x8xf32> to vector<2x8xf32>
    %252 = vector.shape_cast %251 : vector<2x8xf32> to vector<2x8x1xf32>
    %253 = tpu.reciprocal %252 {approx = true} : vector<2x8x1xf32> -> vector<2x8x1xf32>
    %254 = vector.broadcast %253 : vector<2x8x1xf32> to vector<2x8x8xf32>
    %255 = arith.mulf %250, %254 : vector<2x8x8xf32>
    %256 = arith.truncf %255 : vector<2x8x8xf32> to vector<2x8x8xbf16>
    "tpu.trace_start"() <{level = 10 : i32, message = "bqk,bkd->bqd"}> : () -> ()
    %cst_162 = arith.constant dense<0.000000e+00> : vector<2x8x16xf32>
    %257 = tpu.matmul %256, %241, %cst_162 {dimension_numbers = #tpu.dot_dimension_numbers<[2], [1], [1], [2], [0, 0, 0, 1, 1, 2], [0], [0]>} : vector<2x8x8xbf16>, vector<2x8x16xbf16>, vector<2x8x16xf32> -> vector<2x8x16xf32>
    "tpu.trace_stop"() : () -> ()
    %258 = vector.shape_cast %257 : vector<2x8x16xf32> to vector<16x16xf32>
    %259 = arith.truncf %258 : vector<16x16xf32> to vector<16x16xbf16>
    %c1_163 = arith.constant 1 : index
    %c0_164 = arith.constant 0 : index
    %c0_165 = arith.constant 0 : index
    %c0_166 = arith.constant 0 : index
    %260 = vector.load %arg10[%c1_163, %c0_164, %c0_165, %c0_166] : memref<2x2x16x32xbf16, #tpu.memory_space<vmem>>, vector<1x1x16x32xbf16>
    %261 = vector.shape_cast %260 : vector<1x1x16x32xbf16> to vector<16x32xbf16>
    %cst_167 = arith.constant dense<0.000000e+00> : vector<16x32xf32>
    %262 = tpu.matmul %259, %261, %cst_167 {dimension_numbers = #tpu.dot_dimension_numbers<[1], [0], [0], [1], [0, 0, 1, 1], [], []>} : vector<16x16xbf16>, vector<16x32xbf16>, vector<16x32xf32> -> vector<16x32xf32>
    %263 = arith.addf %214, %262 : vector<16x32xf32>
    %c1_168 = arith.constant 1 : index
    %c1_169 = arith.constant 1 : index
    %c0_170 = arith.constant 0 : index
    %c0_171 = arith.constant 0 : index
    %264 = vector.load %arg4[%c1_168, %c1_169, %c0_170, %c0_171] : memref<2x2x32x16xbf16, #tpu.memory_space<vmem>>, vector<1x1x32x16xbf16>
    %265 = vector.shape_cast %264 : vector<1x1x32x16xbf16> to vector<32x16xbf16>
    %cst_172 = arith.constant dense<0.000000e+00> : vector<16x16xf32>
    %266 = tpu.matmul %213, %265, %cst_172 {dimension_numbers = #tpu.dot_dimension_numbers<[1], [0], [0], [1], [0, 0, 1, 1], [], []>} : vector<16x32xbf16>, vector<32x16xbf16>, vector<16x16xf32> -> vector<16x16xf32>
    %c1_173 = arith.constant 1 : index
    %c1_174 = arith.constant 1 : index
    %c0_175 = arith.constant 0 : index
    %c0_176 = arith.constant 0 : index
    %267 = vector.load %arg7[%c1_173, %c1_174, %c0_175, %c0_176] : memref<2x2x1x16xf32, #tpu.memory_space<vmem>>, vector<1x1x1x16xf32>
    %268 = vector.shape_cast %267 : vector<1x1x1x16xf32> to vector<1x16xf32>
    %269 = vector.broadcast %268 : vector<1x16xf32> to vector<16x16xf32>
    %270 = arith.addf %266, %269 : vector<16x16xf32>
    %271 = arith.truncf %270 : vector<16x16xf32> to vector<16x16xbf16>
    %272 = vector.shape_cast %271 : vector<16x16xbf16> to vector<2x8x16xbf16>
    %c1_177 = arith.constant 1 : index
    %c1_178 = arith.constant 1 : index
    %c0_179 = arith.constant 0 : index
    %c0_180 = arith.constant 0 : index
    %273 = vector.load %arg5[%c1_177, %c1_178, %c0_179, %c0_180] : memref<2x2x32x16xbf16, #tpu.memory_space<vmem>>, vector<1x1x32x16xbf16>
    %274 = vector.shape_cast %273 : vector<1x1x32x16xbf16> to vector<32x16xbf16>
    %cst_181 = arith.constant dense<0.000000e+00> : vector<16x16xf32>
    %275 = tpu.matmul %213, %274, %cst_181 {dimension_numbers = #tpu.dot_dimension_numbers<[1], [0], [0], [1], [0, 0, 1, 1], [], []>} : vector<16x32xbf16>, vector<32x16xbf16>, vector<16x16xf32> -> vector<16x16xf32>
    %c1_182 = arith.constant 1 : index
    %c1_183 = arith.constant 1 : index
    %c0_184 = arith.constant 0 : index
    %c0_185 = arith.constant 0 : index
    %276 = vector.load %arg8[%c1_182, %c1_183, %c0_184, %c0_185] : memref<2x2x1x16xf32, #tpu.memory_space<vmem>>, vector<1x1x1x16xf32>
    %277 = vector.shape_cast %276 : vector<1x1x1x16xf32> to vector<1x16xf32>
    %278 = vector.broadcast %277 : vector<1x16xf32> to vector<16x16xf32>
    %279 = arith.addf %275, %278 : vector<16x16xf32>
    %280 = arith.truncf %279 : vector<16x16xf32> to vector<16x16xbf16>
    %281 = vector.shape_cast %280 : vector<16x16xbf16> to vector<2x8x16xbf16>
    %c1_186 = arith.constant 1 : index
    %c1_187 = arith.constant 1 : index
    %c0_188 = arith.constant 0 : index
    %c0_189 = arith.constant 0 : index
    %282 = vector.load %arg6[%c1_186, %c1_187, %c0_188, %c0_189] : memref<2x2x32x16xbf16, #tpu.memory_space<vmem>>, vector<1x1x32x16xbf16>
    %283 = vector.shape_cast %282 : vector<1x1x32x16xbf16> to vector<32x16xbf16>
    %cst_190 = arith.constant dense<0.000000e+00> : vector<16x16xf32>
    %284 = tpu.matmul %213, %283, %cst_190 {dimension_numbers = #tpu.dot_dimension_numbers<[1], [0], [0], [1], [0, 0, 1, 1], [], []>} : vector<16x32xbf16>, vector<32x16xbf16>, vector<16x16xf32> -> vector<16x16xf32>
    %c1_191 = arith.constant 1 : index
    %c1_192 = arith.constant 1 : index
    %c0_193 = arith.constant 0 : index
    %c0_194 = arith.constant 0 : index
    %285 = vector.load %arg9[%c1_191, %c1_192, %c0_193, %c0_194] : memref<2x2x1x16xf32, #tpu.memory_space<vmem>>, vector<1x1x1x16xf32>
    %286 = vector.shape_cast %285 : vector<1x1x1x16xf32> to vector<1x16xf32>
    %287 = vector.broadcast %286 : vector<1x16xf32> to vector<16x16xf32>
    %288 = arith.addf %284, %287 : vector<16x16xf32>
    %289 = arith.truncf %288 : vector<16x16xf32> to vector<16x16xbf16>
    %290 = vector.shape_cast %289 : vector<16x16xbf16> to vector<2x8x16xbf16>
    "tpu.trace_start"() <{level = 10 : i32, message = "bqd,bkd->bqk"}> : () -> ()
    %cst_195 = arith.constant dense<0.000000e+00> : vector<2x8x8xf32>
    %291 = tpu.matmul %272, %281, %cst_195 {dimension_numbers = #tpu.dot_dimension_numbers<[2], [2], [1], [1], [0, 0, 0, 1, 1, 1], [0], [0]>} : vector<2x8x16xbf16>, vector<2x8x16xbf16>, vector<2x8x8xf32> -> vector<2x8x8xf32>
    "tpu.trace_stop"() : () -> ()
    %cst_196 = arith.constant 2.500000e-01 : f32
    %292 = vector.broadcast %cst_196 : f32 to vector<2x8x8xf32>
    %293 = arith.mulf %291, %292 : vector<2x8x8xf32>
    %294 = arith.addf %293, %28 : vector<2x8x8xf32>
    %cst_197 = arith.constant dense<0xFF800000> : vector<2x8xf32>
    %295 = vector.multi_reduction <maximumf>, %294, %cst_197 [2] : vector<2x8x8xf32> to vector<2x8xf32>
    %296 = vector.shape_cast %295 : vector<2x8xf32> to vector<2x8x1xf32>
    %297 = vector.broadcast %296 : vector<2x8x1xf32> to vector<2x8x8xf32>
    %298 = arith.subf %294, %297 : vector<2x8x8xf32>
    %299 = math.exp %298 : vector<2x8x8xf32>
    %cst_198 = arith.constant dense<0.000000e+00> : vector<2x8xf32>
    %300 = vector.multi_reduction <add>, %299, %cst_198 [2] : vector<2x8x8xf32> to vector<2x8xf32>
    %301 = vector.shape_cast %300 : vector<2x8xf32> to vector<2x8x1xf32>
    %302 = tpu.reciprocal %301 {approx = true} : vector<2x8x1xf32> -> vector<2x8x1xf32>
    %303 = vector.broadcast %302 : vector<2x8x1xf32> to vector<2x8x8xf32>
    %304 = arith.mulf %299, %303 : vector<2x8x8xf32>
    %305 = arith.truncf %304 : vector<2x8x8xf32> to vector<2x8x8xbf16>
    "tpu.trace_start"() <{level = 10 : i32, message = "bqk,bkd->bqd"}> : () -> ()
    %cst_199 = arith.constant dense<0.000000e+00> : vector<2x8x16xf32>
    %306 = tpu.matmul %305, %290, %cst_199 {dimension_numbers = #tpu.dot_dimension_numbers<[2], [1], [1], [2], [0, 0, 0, 1, 1, 2], [0], [0]>} : vector<2x8x8xbf16>, vector<2x8x16xbf16>, vector<2x8x16xf32> -> vector<2x8x16xf32>
    "tpu.trace_stop"() : () -> ()
    %307 = vector.shape_cast %306 : vector<2x8x16xf32> to vector<16x16xf32>
    %308 = arith.truncf %307 : vector<16x16xf32> to vector<16x16xbf16>
    %c1_200 = arith.constant 1 : index
    %c1_201 = arith.constant 1 : index
    %c0_202 = arith.constant 0 : index
    %c0_203 = arith.constant 0 : index
    %309 = vector.load %arg10[%c1_200, %c1_201, %c0_202, %c0_203] : memref<2x2x16x32xbf16, #tpu.memory_space<vmem>>, vector<1x1x16x32xbf16>
    %310 = vector.shape_cast %309 : vector<1x1x16x32xbf16> to vector<16x32xbf16>
    %cst_204 = arith.constant dense<0.000000e+00> : vector<16x32xf32>
    %311 = tpu.matmul %308, %310, %cst_204 {dimension_numbers = #tpu.dot_dimension_numbers<[1], [0], [0], [1], [0, 0, 1, 1], [], []>} : vector<16x16xbf16>, vector<16x32xbf16>, vector<16x32xf32> -> vector<16x32xf32>
    %312 = arith.addf %263, %311 : vector<16x32xf32>
    %c1_205 = arith.constant 1 : index
    %c0_206 = arith.constant 0 : index
    %c0_207 = arith.constant 0 : index
    %313 = vector.load %arg11[%c1_205, %c0_206, %c0_207] : memref<2x1x32xf32, #tpu.memory_space<vmem>>, vector<1x1x32xf32>
    %314 = vector.shape_cast %313 : vector<1x1x32xf32> to vector<1x32xf32>
    %315 = vector.broadcast %314 : vector<1x32xf32> to vector<16x32xf32>
    %316 = arith.addf %312, %315 : vector<16x32xf32>
    %317 = arith.addf %212, %316 : vector<16x32xf32>
    %c1_208 = arith.constant 1 : index
    %c0_209 = arith.constant 0 : index
    %c0_210 = arith.constant 0 : index
    %318 = vector.load %arg12[%c1_208, %c0_209, %c0_210] : memref<2x1x32xf32, #tpu.memory_space<vmem>>, vector<1x1x32xf32>
    %319 = vector.shape_cast %318 : vector<1x1x32xf32> to vector<1x32xf32>
    %c1_211 = arith.constant 1 : index
    %c0_212 = arith.constant 0 : index
    %c0_213 = arith.constant 0 : index
    %320 = vector.load %arg13[%c1_211, %c0_212, %c0_213] : memref<2x1x32xf32, #tpu.memory_space<vmem>>, vector<1x1x32xf32>
    %321 = vector.shape_cast %320 : vector<1x1x32xf32> to vector<1x32xf32>
    %cst_214 = arith.constant dense<0.000000e+00> : vector<16xf32>
    %322 = vector.multi_reduction <add>, %317, %cst_214 [1] : vector<16x32xf32> to vector<16xf32>
    %323 = vector.shape_cast %322 : vector<16xf32> to vector<16x1xf32>
    %cst_215 = arith.constant 3.200000e+01 : f32
    %324 = vector.broadcast %cst_215 : f32 to vector<16x1xf32>
    %325 = arith.divf %323, %324 : vector<16x1xf32>
    %326 = vector.broadcast %325 : vector<16x1xf32> to vector<16x32xf32>
    %327 = arith.subf %317, %326 : vector<16x32xf32>
    %328 = arith.mulf %327, %327 : vector<16x32xf32>
    %cst_216 = arith.constant dense<0.000000e+00> : vector<16xf32>
    %329 = vector.multi_reduction <add>, %328, %cst_216 [1] : vector<16x32xf32> to vector<16xf32>
    %330 = vector.shape_cast %329 : vector<16xf32> to vector<16x1xf32>
    %cst_217 = arith.constant 3.200000e+01 : f32
    %331 = vector.broadcast %cst_217 : f32 to vector<16x1xf32>
    %332 = arith.divf %330, %331 : vector<16x1xf32>
    %333 = vector.broadcast %325 : vector<16x1xf32> to vector<16x32xf32>
    %334 = arith.subf %317, %333 : vector<16x32xf32>
    %cst_218 = arith.constant 9.99999996E-13 : f32
    %335 = vector.broadcast %cst_218 : f32 to vector<16x1xf32>
    %336 = arith.addf %332, %335 : vector<16x1xf32>
    %337 = math.rsqrt %336 : vector<16x1xf32>
    %338 = vector.broadcast %337 : vector<16x1xf32> to vector<16x32xf32>
    %339 = arith.mulf %334, %338 : vector<16x32xf32>
    %340 = vector.broadcast %319 : vector<1x32xf32> to vector<16x32xf32>
    %341 = arith.mulf %339, %340 : vector<16x32xf32>
    %342 = vector.broadcast %321 : vector<1x32xf32> to vector<16x32xf32>
    %343 = arith.addf %341, %342 : vector<16x32xf32>
    %344 = arith.truncf %343 : vector<16x32xf32> to vector<16x32xbf16>
    %c1_219 = arith.constant 1 : index
    %c0_220 = arith.constant 0 : index
    %c0_221 = arith.constant 0 : index
    %345 = vector.load %arg14[%c1_219, %c0_220, %c0_221] : memref<2x32x64xbf16, #tpu.memory_space<vmem>>, vector<1x32x64xbf16>
    %346 = vector.shape_cast %345 : vector<1x32x64xbf16> to vector<32x64xbf16>
    %cst_222 = arith.constant dense<0.000000e+00> : vector<16x64xf32>
    %347 = tpu.matmul %344, %346, %cst_222 {dimension_numbers = #tpu.dot_dimension_numbers<[1], [0], [0], [1], [0, 0, 1, 1], [], []>} : vector<16x32xbf16>, vector<32x64xbf16>, vector<16x64xf32> -> vector<16x64xf32>
    %c1_223 = arith.constant 1 : index
    %c0_224 = arith.constant 0 : index
    %c0_225 = arith.constant 0 : index
    %348 = vector.load %arg15[%c1_223, %c0_224, %c0_225] : memref<2x1x64xf32, #tpu.memory_space<vmem>>, vector<1x1x64xf32>
    %349 = vector.shape_cast %348 : vector<1x1x64xf32> to vector<1x64xf32>
    %350 = vector.broadcast %349 : vector<1x64xf32> to vector<16x64xf32>
    %351 = arith.addf %347, %350 : vector<16x64xf32>
    %cst_226 = arith.constant 5.000000e-01 : f32
    %352 = vector.broadcast %cst_226 : f32 to vector<16x64xf32>
    %353 = arith.mulf %352, %351 : vector<16x64xf32>
    %cst_227 = arith.constant 2.000000e+00 : f32
    %354 = math.sqrt %cst_227 : f32
    %cst_228 = arith.constant 1.000000e+00 : f32
    %355 = arith.divf %cst_228, %354 : f32
    %356 = vector.broadcast %355 : f32 to vector<16x64xf32>
    %357 = arith.mulf %351, %356 : vector<16x64xf32>
    %358 = math.erf %357 : vector<16x64xf32>
    %cst_229 = arith.constant 1.000000e+00 : f32
    %359 = vector.broadcast %cst_229 : f32 to vector<16x64xf32>
    %360 = arith.addf %359, %358 : vector<16x64xf32>
    %361 = arith.mulf %353, %360 : vector<16x64xf32>
    %362 = arith.truncf %361 : vector<16x64xf32> to vector<16x64xbf16>
    %c1_230 = arith.constant 1 : index
    %c0_231 = arith.constant 0 : index
    %c0_232 = arith.constant 0 : index
    %363 = vector.load %arg16[%c1_230, %c0_231, %c0_232] : memref<2x64x32xbf16, #tpu.memory_space<vmem>>, vector<1x64x32xbf16>
    %364 = vector.shape_cast %363 : vector<1x64x32xbf16> to vector<64x32xbf16>
    %cst_233 = arith.constant dense<0.000000e+00> : vector<16x32xf32>
    %365 = tpu.matmul %362, %364, %cst_233 {dimension_numbers = #tpu.dot_dimension_numbers<[1], [0], [0], [1], [0, 0, 1, 1], [], []>} : vector<16x64xbf16>, vector<64x32xbf16>, vector<16x32xf32> -> vector<16x32xf32>
    %c1_234 = arith.constant 1 : index
    %c0_235 = arith.constant 0 : index
    %c0_236 = arith.constant 0 : index
    %366 = vector.load %arg17[%c1_234, %c0_235, %c0_236] : memref<2x1x32xf32, #tpu.memory_space<vmem>>, vector<1x1x32xf32>
    %367 = vector.shape_cast %366 : vector<1x1x32xf32> to vector<1x32xf32>
    %368 = vector.broadcast %367 : vector<1x32xf32> to vector<16x32xf32>
    %369 = arith.addf %365, %368 : vector<16x32xf32>
    %370 = arith.addf %343, %369 : vector<16x32xf32>
    %c1_237 = arith.constant 1 : index
    %c0_238 = arith.constant 0 : index
    %c0_239 = arith.constant 0 : index
    %371 = vector.load %arg18[%c1_237, %c0_238, %c0_239] : memref<2x1x32xf32, #tpu.memory_space<vmem>>, vector<1x1x32xf32>
    %372 = vector.shape_cast %371 : vector<1x1x32xf32> to vector<1x32xf32>
    %c1_240 = arith.constant 1 : index
    %c0_241 = arith.constant 0 : index
    %c0_242 = arith.constant 0 : index
    %373 = vector.load %arg19[%c1_240, %c0_241, %c0_242] : memref<2x1x32xf32, #tpu.memory_space<vmem>>, vector<1x1x32xf32>
    %374 = vector.shape_cast %373 : vector<1x1x32xf32> to vector<1x32xf32>
    %cst_243 = arith.constant dense<0.000000e+00> : vector<16xf32>
    %375 = vector.multi_reduction <add>, %370, %cst_243 [1] : vector<16x32xf32> to vector<16xf32>
    %376 = vector.shape_cast %375 : vector<16xf32> to vector<16x1xf32>
    %cst_244 = arith.constant 3.200000e+01 : f32
    %377 = vector.broadcast %cst_244 : f32 to vector<16x1xf32>
    %378 = arith.divf %376, %377 : vector<16x1xf32>
    %379 = vector.broadcast %378 : vector<16x1xf32> to vector<16x32xf32>
    %380 = arith.subf %370, %379 : vector<16x32xf32>
    %381 = arith.mulf %380, %380 : vector<16x32xf32>
    %cst_245 = arith.constant dense<0.000000e+00> : vector<16xf32>
    %382 = vector.multi_reduction <add>, %381, %cst_245 [1] : vector<16x32xf32> to vector<16xf32>
    %383 = vector.shape_cast %382 : vector<16xf32> to vector<16x1xf32>
    %cst_246 = arith.constant 3.200000e+01 : f32
    %384 = vector.broadcast %cst_246 : f32 to vector<16x1xf32>
    %385 = arith.divf %383, %384 : vector<16x1xf32>
    %386 = vector.broadcast %378 : vector<16x1xf32> to vector<16x32xf32>
    %387 = arith.subf %370, %386 : vector<16x32xf32>
    %cst_247 = arith.constant 9.99999996E-13 : f32
    %388 = vector.broadcast %cst_247 : f32 to vector<16x1xf32>
    %389 = arith.addf %385, %388 : vector<16x1xf32>
    %390 = math.rsqrt %389 : vector<16x1xf32>
    %391 = vector.broadcast %390 : vector<16x1xf32> to vector<16x32xf32>
    %392 = arith.mulf %387, %391 : vector<16x32xf32>
    %393 = vector.broadcast %372 : vector<1x32xf32> to vector<16x32xf32>
    %394 = arith.mulf %392, %393 : vector<16x32xf32>
    %395 = vector.broadcast %374 : vector<1x32xf32> to vector<16x32xf32>
    %396 = arith.addf %394, %395 : vector<16x32xf32>
    %397 = vector.shape_cast %396 : vector<16x32xf32> to vector<2x8x32xf32>
    %c0_248 = arith.constant 0 : index
    %c0_249 = arith.constant 0 : index
    %c0_250 = arith.constant 0 : index
    %398 = vector.load %arg20[%c0_248, %c0_249, %c0_250] : memref<2x8x32xf32, #tpu.memory_space<vmem>>, vector<2x8x32xf32>
    tpu.vector_store %arg20[%c0_248, %c0_249, %c0_250], %397 {strides = array<i32>} : memref<2x8x32xf32, #tpu.memory_space<vmem>>, vector<2x8x32xf32>,
    return
  }
}

</mosaic_0001>

<bundles_post_ra>
// kernel: bert_backbone_forward.1
= control target key start
LH: loop header
LB: loop body
LE: loop exit
PB: predicated region body
PF: predicated region fallthrough
CT: control target
= control target key end

     0   :  { %s3929_s0 = inlined_call_operand.vmem [shape: f32[2,8,32], index: 0, kind: input, shape index: {}]   ;;  %s3930_s1 = inlined_call_operand.vmem [shape: f32[2,1,8], index: 1, kind: input, shape index: {}]   ;;  %s3931_s2 = inlined_call_operand.vmem [shape: f32[1,32], index: 2, kind: input, shape index: {}]   ;;  %s3932_s3 = inlined_call_operand.vmem [shape: f32[1,32], index: 3, kind: input, shape index: {}]   ;;  %s3933_s4 = inlined_call_operand.vmem [shape: bf16[2,2,32,16], index: 4, kind: input, shape index: {}]   ;;  %s3934_s5 = inlined_call_operand.vmem [shape: bf16[2,2,32,16], index: 5, kind: input, shape index: {}]   ;;  %s3935_s6 = inlined_call_operand.vmem [shape: bf16[2,2,32,16], index: 6, kind: input, shape index: {}]   ;;  %s3936_s7 = inlined_call_operand.vmem [shape: f32[2,2,1,16], index: 7, kind: input, shape index: {}]   ;;  %s3937_s8 = inlined_call_operand.vmem [shape: f32[2,2,1,16], index: 8, kind: input, shape index: {}]   ;;  %s3938_s9 = inlined_call_operand.vmem [shape: f32[2,2,1,16], index: 9, kind: input, shape index: {}]   ;;  %s3939_s10 = inlined_call_operand.vmem [shape: bf16[2,2,16,32], index: 10, kind: input, shape index: {}]   ;;  %s3940_s11 = inlined_call_operand.vmem [shape: f32[2,1,32], index: 11, kind: input, shape index: {}]   ;;  %s3941_s12 = inlined_call_operand.vmem [shape: f32[2,1,32], index: 12, kind: input, shape index: {}]   ;;  %s3942_s13 = inlined_call_operand.vmem [shape: f32[2,1,32], index: 13, kind: input, shape index: {}]   ;;  %s3943_s14 = inlined_call_operand.vmem [shape: bf16[2,32,64], index: 14, kind: input, shape index: {}]   ;;  %s3944_s15 = inlined_call_operand.vmem [shape: f32[2,1,64], index: 15, kind: input, shape index: {}]   ;;  %s3945_s16 = inlined_call_operand.vmem [shape: bf16[2,64,32], index: 16, kind: input, shape index: {}]   ;;  %s3946_s17 = inlined_call_operand.vmem [shape: f32[2,1,32], index: 17, kind: input, shape index: {}]   ;;  %s3947_s18 = inlined_call_operand.vmem [shape: f32[2,1,32], index: 18, kind: input, shape index: {}]   ;;  %s3948_s19 = inlined_call_operand.vmem [shape: f32[2,1,32], index: 19, kind: input, shape index: {}]   ;;  %s3949_s20 = inlined_call_operand.hbm [shape: f32[2,8,32], index: 20, kind: output, shape index: {}]  }
   0x1   :  { %3953 = sst [smem:[#allocation5_spill]] %s3929_s0 }
   0x2   :  { %3954 = sst [smem:[#allocation6_spill]] %s3930_s1 }
   0x3   :  { %3955 = sst [smem:[#allocation7_spill]] %s3931_s2 }
   0x4   :  { %3956 = sst [smem:[#allocation8_spill]] %s3932_s3 }
   0x5   :  { %3957 = sst [smem:[#allocation9_spill]] %s3933_s4 }
   0x6   :  { %s3958_s23 = sld [smem:[#allocation5_spill]]  ;;  %vm71_vm0 = vcmask 261120  }
   0xc   :  { %v67_v0 = vld [vmem:[%s3958_s23] sm:$0xff]  ;;  %v68_v1 = vld [vmem:[%s3958_s23 + $0x8] sm:$0xff] }
   0xd   :  { %v72_v2 = vsel %vm71_vm0, %v67_v0, 0.0  ;;  %v75_v3 = vsel %vm71_vm0, %v68_v1, 0.0 }
   0xe   :  { %73 = vadd.xlane.f32.xlu0 %v72_v2 }
  0x12   :  { %76 = vadd.xlane.f32.xlu0 %v75_v3 }
  0x13   :  { %25 = vsyncpa [#allocation3], 0  ;;  %s3959_s26 = sld [smem:[#allocation9_spill]]  ;;  %v3193_v15 = vld [vmem:[%s3935_s6 + $0x8] sm:$0xff]   ;;  %v3316_v16 = vmov 0.0   ;;  %v3195_v18 = vld [vmem:[%s3935_s6] sm:$0xff]  }
  0x14   :  { %2931 = vmatprep.subr.bf16.mxu1 %v3316_v16  ;;  %2947 = vmatprep.subr.bf16.mxu0 %v3316_v16  ;;  %vm3317_vm1 = vmmov 0   ;;  %s3960_s22 = sld [smem:[#allocation7_spill]]  ;;  %v3196_v35 = vld [vmem:[%s3934_s5 + $0x8] sm:$0xff]   ;;  %v3197_v37 = vld [vmem:[%s3934_s5] sm:$0xff]   ;;  %vm343_vm2 = vcmask 130048   ;;  %vm468_vm3 = vcmask 1043456  }
  0x15   :  { %2948 = vmatpush3.bf16.msra.mxu0 %v3193_v15  ;;  %2935 = vmatprep.mubr.msk.bf16.mxu1 %vm3317_vm1, %v3316_v16  ;;  %s3961_s2 = sld [smem:[#allocation8_spill]]  ;;  %v2625_v46 = vld [vmem:[%s3937_s8] ss:$0 sm:$0xff]  ;;  %vm440_vm4 = vcmask 64512   ;;  %vm1266_vm5 = vcmask 523264   ;;  %s3318_s30 = smov [#allocation2]  }
  0x16   :  { %2949 = vmatprep.subr.bf16.mxu0 %v3316_v16  ;;  %2951 = vmatprep.mubr.msk.bf16.mxu0 %vm3317_vm1, %v3316_v16  ;;  %v2631_v49 = vld [vmem:[%s3938_s9] ss:$0 sm:$0xff]  ;;  %s3962_s24 = sld [smem:[#allocation6_spill]]  ;;  %s2604_s0 = sshll.u32 %s3318_s30, 4  ;;  %s2605_s0 = int_to_ptr.vmem [resolvable:$true] %s2604_s0 }
  0x17   :  { %v2619_v52 = vld [vmem:[%s3936_s7] ss:$0 sm:$0xff]  ;;  %p3299_p1 = scmp.lt.s32.totalorder %s2605_s0, %s2605_s0 }
  0x19   :  { %v3192_v14 = vld [vmem:[%s3959_s26 + $0x8] sm:$0xff]   ;;  %v3194_v17 = vld [vmem:[%s3959_s26] sm:$0xff]   ;;  %2950 = vmatpush3.bf16.msra.mxu0 %v3195_v18 }
  0x1a   :  { %2932 = vmatpush3.bf16.msra.mxu1 %v3192_v14  ;;  %2961 = vmatprep.subr.bf16.mxu0 %v3316_v16  ;;  %v2615_v27 = vld [vmem:[%s3960_s22] ss:$0 sm:$0xff] }
  0x1b   :  { %2933 = vmatprep.subr.bf16.mxu1 %v3316_v16  ;;  %v2616_v31 = vld [vmem:[%s3961_s2] ss:$0 sm:$0xff] }
  0x1e   :  { %2934 = vmatpush3.bf16.msra.mxu1 %v3194_v17 }
  0x1f   :  { %2939 = vmatprep.subr.bf16.mxu1 %v3316_v16 }
  0x97   :  { %v74_v4 = vpop.xlane.xlu0 %73 }
  0x98   :  { %v79_v5 = vmul.f32 0.03125, %v74_v4 }
  0x9a   :  { %v81_v6 = vsub.f32 %v67_v0, %v79_v5 }
  0x9b   :  { %v77_v7 = vpop.xlane.xlu0 %76 }
  0x9c   :  { %v80_v8 = vmul.f32 0.03125, %v77_v7  ;;  %v83_v9 = vmul.f32 %v81_v6, %v81_v6 }
  0x9e   :  { %v82_v10 = vsub.f32 %v68_v1, %v80_v8  ;;  %v85_v11 = vsel %vm71_vm0, %v83_v9, 0.0 }
  0x9f   :  { %86 = vadd.xlane.f32.xlu1 %v85_v11 }
  0xa0   :  { %v84_v12 = vmul.f32 %v82_v10, %v82_v10 }
  0xa2   :  { %v88_v13 = vsel %vm71_vm0, %v84_v12, 0.0  ;;  %v3524_v12 = vld [vmem:[%s3962_s24 + $0x1] ss:$0 sm:$0xff] }
  0xa3   :  { %89 = vadd.xlane.f32.xlu1 %v88_v13 }
 0x128   :  { %v87_v19 = vpop.xlane.xlu1 %86 }
 0x129   :  { %v91_v20 = vmul.f32 0.03125, %v87_v19 }
 0x12b   :  { %v93_v21 = vadd.f32 1e-12, %v91_v20 }
 0x12c   :  { %v90_v22 = vpop.xlane.xlu1 %89 }
 0x12d   :  { %3232 = vrsqrt.f32 %v93_v21  ;;  %v92_v23 = vmul.f32 0.03125, %v90_v22 }
 0x12f   :  { %v94_v24 = vadd.f32 1e-12, %v92_v23 }
 0x131   :  { %3234 = vrsqrt.f32 %v94_v24 }
 0x13a   :  { %v3233_v25 = vpop.eup %3232 }
 0x13b   :  { %v97_v26 = vmul.f32 %v3233_v25, %v81_v6  ;;  %v3518_v6 = vld [vmem:[%s3962_s24] ss:$0 sm:$0xff] }
 0x13d   :  { %v105_v29 = vmul.f32 %v2615_v27, %v97_v26 }
 0x13e   :  { %v3235_v28 = vpop.eup %3234 }
 0x13f   :  { %v98_v30 = vmul.f32 %v3235_v28, %v82_v10  ;;  %v3464_v33 = vadd.f32 %v2616_v31, %v105_v29 }
 0x141   :  { %v106_v32 = vmul.f32 %v2615_v27, %v98_v30 }
 0x143   :  { %v3466_v34 = vadd.f32 %v2616_v31, %v106_v32 }
 0x145   :  { %v3473_v36 = vpack.c.bf16 %v3466_v34, %v3464_v33 }
 0x147   :  { %2936 = vmatmul.mubr.msk.bf16.vlgmr.msra.gmra.mxu1 %vm71_vm0, %v3473_v36  ;;  %2952 = vmatmul.mubr.msk.bf16.vlgmr.msra.gmra.mxu0 %vm71_vm0, %v3473_v36 }
 0x148   :  { %2940 = vmatpush3.bf16.msra.mxu1 %v3196_v35  ;;  %2943 = vmatprep.mubr.msk.bf16.mxu1 %vm3317_vm1, %v3316_v16 }
 0x149   :  { %2941 = vmatprep.subr.bf16.mxu1 %v3316_v16  ;;  %2963 = vmatprep.mubr.msk.bf16.mxu0 %vm3317_vm1, %v3316_v16 }
 0x14c   :  { %2942 = vmatpush3.bf16.msra.mxu1 %v3197_v37 }
 0x14d   :  { %2955 = vmatprep.subr.bf16.mxu1 %v3316_v16 }
 0x14f   :  { %2944 = vmatmul.mubr.msk.bf16.vlgmr.msra.gmra.mxu1 %vm71_vm0, %v3473_v36 }
 0x150   :  { %2957 = vmatprep.mubr.msk.bf16.mxu1 %vm3317_vm1, %v3316_v16 }
 0x207   :  { %v190_v38 = vpop.f32.mrf.mxu1  ;;  %v330_v39 = vpop.f32.mrf.mxu0 }
 0x208   :  { %v331_v54 = vadd.f32 %v2631_v49, %v330_v39  ;;  %v191_v58 = vadd.f32 %v2619_v52, %v190_v38  ;;  %v3198_v39 = vld [vmem:[%s3959_s26 + $0x18] sm:$0xff]  }
 0x209   :  { %v2937_v40 = vpop.f32.mrf.mxu1  ;;  %v2953_v41 = vpop.f32.mrf.mxu0 }
 0x20a   :  { %v2819_v60 = vpack.c.bf16 %v331_v54, %v331_v54  ;;  %v2815_v63 = vpack.c.bf16 %v191_v58, %v191_v58 }
 0x20b   :  { %v193_v42 = vpop.f32.mrf.mxu1  ;;  %v333_v43 = vpop.f32.mrf.mxu0 }
 0x20c   :  { %v334_v61 = vadd.f32 %v2631_v49, %v333_v43  ;;  %v194_v0 = vadd.f32 %v2619_v52, %v193_v42  ;;  %v470_v1 = vsel %vm468_vm3, %v2819_v60, 0  ;;  %v3199_v43 = vld [vmem:[%s3959_s26 + $0x10] sm:$0xff]  }
 0x20d   :  { %v2938_v44 = vpop.f32.mrf.mxu1  ;;  %v2954_v45 = vpop.f32.mrf.mxu0 }
 0x20e   :  { %v2820_v2 = vpack.c.bf16 %v334_v61, %v334_v61  ;;  %v2816_v3 = vpack.c.bf16 %v194_v0, %v194_v0  ;;  %v3200_v44 = vld [vmem:[%s3934_s5 + $0x18] sm:$0xff]  }
 0x20f   :  { %v260_v47 = vpop.f32.mrf.mxu1 }
 0x210   :  { %v261_v48 = vadd.f32 %v2625_v46, %v260_v47  ;;  %v516_v4 = vsel %vm468_vm3, %v2820_v2, 0  ;;  %v3202_v47 = vld [vmem:[%s3935_s6 + $0x18] sm:$0xff]  }
 0x211   :  { %v2945_v50 = vpop.f32.mrf.mxu1 }
 0x212   :  { %v2817_v51 = vpack.c.bf16 %v261_v48, %v261_v48  ;;  %v3203_v48 = vld [vmem:[%s3935_s6 + $0x10] sm:$0xff]  }
 0x213   :  { %v263_v53 = vpop.f32.mrf.mxu1 }
 0x214   :  { %v348_v55 = vsel %vm343_vm2, %v2817_v51, 0  ;;  %v264_v56 = vadd.f32 %v2625_v46, %v263_v53  ;;  %v3201_v46 = vld [vmem:[%s3934_s5 + $0x10] sm:$0xff]  }
 0x215   :  { %v2946_v57 = vpop.f32.mrf.mxu1  ;;  %2956 = vmatpush3.bf16.xpose.msra.mxu1 %v348_v55 }
 0x216   :  { %v2818_v59 = vpack.c.bf16 %v264_v56, %v264_v56  ;;  %2967 = vmatprep.subr.bf16.mxu1 %v3316_v16 }
 0x218   :  { %v394_v62 = vsel %vm343_vm2, %v2818_v59, 0 }
 0x219   :  { %2962 = vmatpush3.bf16.xpose.msra.mxu0 %v394_v62 }
 0x21a   :  { %2973 = vmatprep.subr.bf16.mxu0 %v3316_v16 }
 0x21c   :  { %2958 = vmatmul.mubr.msk.bf16.vlgmr.msra.gmra.mxu1 %vm343_vm2, %v2815_v63 }
 0x21d   :  { %2968 = vmatpush3.bf16.msra.mxu1 %v470_v1  ;;  %2969 = vmatprep.mubr.msk.bf16.mxu1 %vm3317_vm1, %v3316_v16  ;;  %v2668_v1 = vld [vmem:[%s3938_s9 + $0x1] ss:$0 sm:$0xff] }
 0x21e   :  { %2979 = vmatprep.subr.bf16.mxu1 %v3316_v16 }
 0x220   :  { %2964 = vmatmul.mubr.msk.bf16.vlgmr.msra.gmra.mxu0 %vm343_vm2, %v2816_v3  ;;  %v2646_v3 = vld [vmem:[%s3936_s7 + $0x1] ss:$0 sm:$0xff] }
 0x221   :  { %2974 = vmatpush3.bf16.msra.mxu0 %v516_v4  ;;  %2975 = vmatprep.mubr.msk.bf16.mxu0 %vm3317_vm1, %v3316_v16 }
 0x222   :  { %2987 = vmatprep.subr.bf16.mxu0 %v3316_v16 }
 0x2dc   :  { %v384_v5 = vpop.f32.mrf.mxu1 }
 0x2dd   :  { %v436_v7 = vmul.f32 0.25, %v384_v5 }
 0x2de   :  { %v2959_v8 = vpop.f32.mrf.mxu1 }
 0x2df   :  { %v438_v9 = vadd.f32 %v3518_v6, %v436_v7 }
 0x2e0   :  { %v387_v10 = vpop.f32.mrf.mxu1  ;;  %v430_v11 = vpop.f32.mrf.mxu0 }
 0x2e1   :  { %v437_v13 = vmul.f32 0.25, %v430_v11  ;;  %v441_v14 = vsel %vm440_vm4, %v438_v9, -inf }
 0x2e2   :  { %v2965_v15 = vpop.f32.mrf.mxu0  ;;  %442 = vmax.xlane.f32.xlu1 %v441_v14  ;;  %v2960_v17 = vpop.f32.mrf.mxu1 }
 0x2e3   :  { %v439_v18 = vadd.f32 %v3524_v12, %v437_v13 }
 0x2e4   :  { %v433_v19 = vpop.f32.mrf.mxu0 }
 0x2e5   :  { %v444_v20 = vsel %vm440_vm4, %v439_v18, -inf }
 0x2e6   :  { %445 = vmax.xlane.f32.xlu0 %v444_v20  ;;  %v2966_v21 = vpop.f32.mrf.mxu0 }
 0x36b   :  { %v443_v22 = vpop.xlane.xlu1 %442 }
 0x36c   :  { %v447_v23 = vsub.f32 %v438_v9, %v443_v22 }
 0x36e   :  { %v449_v24 = vmul.f32 1.442695, %v447_v23 }
 0x36f   :  { %v446_v25 = vpop.xlane.xlu0 %445 }
 0x370   :  { %3236 = vpow2.f32 %v449_v24  ;;  %v448_v26 = vsub.f32 %v439_v18, %v446_v25 }
 0x372   :  { %v451_v27 = vmul.f32 1.442695, %v448_v26 }
 0x374   :  { %3238 = vpow2.f32 %v451_v27 }
 0x37d   :  { %v3237_v28 = vpop.eup %3236 }
 0x37e   :  { %v453_v29 = vsel %vm440_vm4, %v3237_v28, 0.0 }
 0x37f   :  { %454 = vadd.xlane.f32.xlu1 %v453_v29 }
 0x381   :  { %v3239_v30 = vpop.eup %3238 }
 0x382   :  { %v456_v31 = vsel %vm440_vm4, %v3239_v30, 0.0 }
 0x383   :  { %457 = vadd.xlane.f32.xlu0 %v456_v31 }
 0x408   :  { %v455_v32 = vpop.xlane.xlu1 %454 }
 0x409   :  { %3240 = vrcp.f32 %v455_v32 }
 0x40c   :  { %v458_v35 = vpop.xlane.xlu0 %457 }
 0x40d   :  { %3242 = vrcp.f32 %v458_v35 }
 0x416   :  { %v3241_v37 = vpop.eup %3240 }
 0x417   :  { %v461_v38 = vmul.f32 %v3241_v37, %v3237_v28 }
 0x419   :  { %v463_v40 = vpack.c.bf16 %v461_v38, %v461_v38 }
 0x41a   :  { %v3243_v41 = vpop.eup %3242 }
 0x41b   :  { %2970 = vmatmul.mubr.msk.bf16.vlgmr.msra.gmra.mxu1 %vm440_vm4, %v463_v40  ;;  %v462_v42 = vmul.f32 %v3243_v41, %v3239_v30 }
 0x41c   :  { %2980 = vmatpush3.bf16.msra.mxu1 %v3198_v39  ;;  %2983 = vmatprep.mubr.msk.bf16.mxu1 %vm3317_vm1, %v3316_v16 }
 0x41d   :  { %v464_v45 = vpack.c.bf16 %v462_v42, %v462_v42  ;;  %2981 = vmatprep.subr.bf16.mxu1 %v3316_v16 }
 0x41f   :  { %2976 = vmatmul.mubr.msk.bf16.vlgmr.msra.gmra.mxu0 %vm440_vm4, %v464_v45 }
 0x420   :  { %2982 = vmatpush3.bf16.msra.mxu1 %v3199_v43  ;;  %2988 = vmatpush3.bf16.msra.mxu0 %v3200_v44 }
 0x421   :  { %2989 = vmatprep.subr.bf16.mxu0 %v3316_v16  ;;  %2995 = vmatprep.subr.bf16.mxu1 %v3316_v16 }
 0x422   :  { %2991 = vmatprep.mubr.msk.bf16.mxu0 %vm3317_vm1, %v3316_v16 }
 0x423   :  { %2984 = vmatmul.mubr.msk.bf16.vlgmr.msra.gmra.mxu1 %vm71_vm0, %v3473_v36 }
 0x424   :  { %2990 = vmatpush3.bf16.msra.mxu0 %v3201_v46  ;;  %2996 = vmatpush3.bf16.msra.mxu1 %v3202_v47 }
 0x425   :  { %2997 = vmatprep.subr.bf16.mxu1 %v3316_v16  ;;  %2999 = vmatprep.mubr.msk.bf16.mxu1 %vm3317_vm1, %v3316_v16 }
 0x426   :  { %3003 = vmatprep.subr.bf16.mxu0 %v3316_v16 }
 0x427   :  { %2992 = vmatmul.mubr.msk.bf16.vlgmr.msra.gmra.mxu0 %vm71_vm0, %v3473_v36 }
 0x428   :  { %2998 = vmatpush3.bf16.msra.mxu1 %v3203_v48  ;;  %3005 = vmatprep.mubr.msk.bf16.mxu0 %vm3317_vm1, %v3316_v16 }
 0x429   :  { %3009 = vmatprep.subr.bf16.mxu1 %v3316_v16 }
 0x42b   :  { %3000 = vmatmul.mubr.msk.bf16.vlgmr.msra.gmra.mxu1 %vm71_vm0, %v3473_v36  ;;  %v2657_v36 = vld [vmem:[%s3937_s8 + $0x1] ss:$0 sm:$0xff] }
 0x42c   :  { %3011 = vmatprep.mubr.msk.bf16.mxu1 %vm3317_vm1, %v3316_v16 }
 0x4db   :  { %v3573_v49 = vpop.f32.mrf.mxu1 }
 0x4dd   :  { %v2971_v50 = vpop.f32.mrf.mxu1 }
 0x4df   :  { %v509_v51 = vpop.f32.mrf.mxu1  ;;  %v3575_v52 = vpop.f32.mrf.mxu0 }
 0x4e0   :  { %v558_v53 = vpack.c.bf16 %v3575_v52, %v3573_v49 }
 0x4e1   :  { %v2972_v54 = vpop.f32.mrf.mxu1  ;;  %v2977_v55 = vpop.f32.mrf.mxu0 }
 0x4e3   :  { %v555_v56 = vpop.f32.mrf.mxu0  ;;  %v620_v57 = vpop.f32.mrf.mxu1 }
 0x4e4   :  { %v621_v13 = vadd.f32 %v2646_v3, %v620_v57 }
 0x4e5   :  { %v2978_v58 = vpop.f32.mrf.mxu0  ;;  %v2985_v59 = vpop.f32.mrf.mxu1 }
 0x4e6   :  { %v2821_v21 = vpack.c.bf16 %v621_v13, %v621_v13 }
 0x4e7   :  { %v623_v60 = vpop.f32.mrf.mxu1  ;;  %v692_v61 = vpop.f32.mrf.mxu0 }
 0x4e8   :  { %v693_v62 = vadd.f32 %v2657_v36, %v692_v61  ;;  %v624_v22 = vadd.f32 %v2646_v3, %v623_v60 }
 0x4e9   :  { %v2986_v63 = vpop.f32.mrf.mxu1  ;;  %v2993_v0 = vpop.f32.mrf.mxu0 }
 0x4ea   :  { %v2823_v2 = vpack.c.bf16 %v693_v62, %v693_v62  ;;  %v2822_v25 = vpack.c.bf16 %v624_v22, %v624_v22  ;;  %v3204_v63 = vld [vmem:[%s3939_s10] sm:$0xff]  }
 0x4eb   :  { %v695_v4 = vpop.f32.mrf.mxu0  ;;  %v764_v5 = vpop.f32.mrf.mxu1 }
 0x4ec   :  { %v781_v7 = vsel %vm343_vm2, %v2823_v2, 0  ;;  %v696_v8 = vadd.f32 %v2657_v36, %v695_v4  ;;  %v765_v9 = vadd.f32 %v2668_v1, %v764_v5 }
 0x4ed   :  { %v2994_v10 = vpop.f32.mrf.mxu0  ;;  %v3001_v11 = vpop.f32.mrf.mxu1  ;;  %3004 = vmatpush3.bf16.xpose.msra.mxu0 %v781_v7 }
 0x4ee   :  { %v2824_v14 = vpack.c.bf16 %v696_v8, %v696_v8  ;;  %3015 = vmatprep.subr.bf16.mxu0 %v3316_v16  ;;  %v2825_v18 = vpack.c.bf16 %v765_v9, %v765_v9 }
 0x4ef   :  { %v767_v15 = vpop.f32.mrf.mxu1 }
 0x4f0   :  { %v827_v17 = vsel %vm343_vm2, %v2824_v14, 0  ;;  %v768_v19 = vadd.f32 %v2668_v1, %v767_v15  ;;  %v901_v23 = vsel %vm468_vm3, %v2825_v18, 0  ;;  %v3205_v1 = vld [vmem:[%s3939_s10 + $0x8] sm:$0xff]   ;;  %v2684_v15 = vld [vmem:[%s3940_s11] ss:$0 sm:$0xff] }
 0x4f1   :  { %v3002_v20 = vpop.f32.mrf.mxu1  ;;  %3010 = vmatpush3.bf16.xpose.msra.mxu1 %v827_v17 }
 0x4f2   :  { %3021 = vmatprep.subr.bf16.mxu1 %v3316_v16  ;;  %v2826_v24 = vpack.c.bf16 %v768_v19, %v768_v19 }
 0x4f4   :  { %3006 = vmatmul.mubr.msk.bf16.vlgmr.msra.gmra.mxu0 %vm343_vm2, %v2821_v21  ;;  %v947_v26 = vsel %vm468_vm3, %v2826_v24, 0 }
 0x4f5   :  { %3016 = vmatpush3.bf16.msra.mxu0 %v901_v23  ;;  %3017 = vmatprep.mubr.msk.bf16.mxu0 %vm3317_vm1, %v3316_v16 }
 0x4f6   :  { %3027 = vmatprep.subr.bf16.mxu0 %v3316_v16 }
 0x4f8   :  { %3012 = vmatmul.mubr.msk.bf16.vlgmr.msra.gmra.mxu1 %vm343_vm2, %v2822_v25 }
 0x4f9   :  { %3022 = vmatpush3.bf16.msra.mxu1 %v947_v26  ;;  %3023 = vmatprep.mubr.msk.bf16.mxu1 %vm3317_vm1, %v3316_v16 }
 0x4fa   :  { %3033 = vmatprep.subr.bf16.mxu1 %v3316_v16 }
 0x5b4   :  { %v817_v27 = vpop.f32.mrf.mxu0 }
 0x5b5   :  { %v869_v28 = vmul.f32 0.25, %v817_v27 }
 0x5b6   :  { %v3007_v29 = vpop.f32.mrf.mxu0 }
 0x5b7   :  { %v871_v30 = vadd.f32 %v3518_v6, %v869_v28 }
 0x5b8   :  { %v820_v31 = vpop.f32.mrf.mxu0  ;;  %v863_v32 = vpop.f32.mrf.mxu1 }
 0x5b9   :  { %v870_v35 = vmul.f32 0.25, %v863_v32  ;;  %v873_v37 = vsel %vm440_vm4, %v871_v30, -inf }
 0x5ba   :  { %874 = vmax.xlane.f32.xlu0 %v873_v37  ;;  %v3008_v38 = vpop.f32.mrf.mxu0  ;;  %v3013_v39 = vpop.f32.mrf.mxu1 }
 0x5bb   :  { %v872_v40 = vadd.f32 %v3524_v12, %v870_v35 }
 0x5bc   :  { %v866_v41 = vpop.f32.mrf.mxu1 }
 0x5bd   :  { %v876_v42 = vsel %vm440_vm4, %v872_v40, -inf }
 0x5be   :  { %877 = vmax.xlane.f32.xlu1 %v876_v42  ;;  %v3014_v43 = vpop.f32.mrf.mxu1 }
 0x643   :  { %v875_v44 = vpop.xlane.xlu0 %874 }
 0x644   :  { %v879_v45 = vsub.f32 %v871_v30, %v875_v44 }
 0x646   :  { %v881_v46 = vmul.f32 1.442695, %v879_v45 }
 0x647   :  { %v878_v47 = vpop.xlane.xlu1 %877 }
 0x648   :  { %3244 = vpow2.f32 %v881_v46  ;;  %v880_v48 = vsub.f32 %v872_v40, %v878_v47  ;;  %v3207_v40 = vld [vmem:[%s3943_s14] sm:$0xff]  }
 0x64a   :  { %v883_v50 = vmul.f32 1.442695, %v880_v48 }
 0x64c   :  { %3246 = vpow2.f32 %v883_v50  ;;  %v2685_v50 = vld [vmem:[%s3941_s12] ss:$0 sm:$0xff] }
 0x655   :  { %v3245_v51 = vpop.eup %3244 }
 0x656   :  { %v885_v54 = vsel %vm440_vm4, %v3245_v51, 0.0 }
 0x657   :  { %886 = vadd.xlane.f32.xlu0 %v885_v54 }
 0x659   :  { %v3247_v55 = vpop.eup %3246 }
 0x65a   :  { %v888_v56 = vsel %vm440_vm4, %v3247_v55, 0.0 }
 0x65b   :  { %889 = vadd.xlane.f32.xlu1 %v888_v56  ;;  %v2686_v56 = vld [vmem:[%s3942_s13] ss:$0 sm:$0xff] }
 0x6e0   :  { %v887_v57 = vpop.xlane.xlu0 %886 }
 0x6e1   :  { %3248 = vrcp.f32 %v887_v57 }
 0x6e4   :  { %v890_v58 = vpop.xlane.xlu1 %889 }
 0x6e5   :  { %3250 = vrcp.f32 %v890_v58 }
 0x6ee   :  { %v3249_v59 = vpop.eup %3248 }
 0x6ef   :  { %v893_v36 = vmul.f32 %v3249_v59, %v3245_v51 }
 0x6f1   :  { %v895_v60 = vpack.c.bf16 %v893_v36, %v893_v36 }
 0x6f2   :  { %v3251_v61 = vpop.eup %3250 }
 0x6f3   :  { %3018 = vmatmul.mubr.msk.bf16.vlgmr.msra.gmra.mxu0 %vm440_vm4, %v895_v60  ;;  %v894_v62 = vmul.f32 %v3251_v61, %v3247_v55  ;;  %v3208_v60 = vld [vmem:[%s3945_s16 + $0x18] sm:$0xff]   ;;  %v3209_v61 = vld [vmem:[%s3945_s16 + $0x10] sm:$0xff]  }
 0x6f4   :  { %3029 = vmatprep.mubr.msk.bf16.mxu0 %vm3317_vm1, %v3316_v16  ;;  %3028 = vmatpush3.bf16.msra.mxu0 %v3205_v1 }
 0x6f5   :  { %v896_v0 = vpack.c.bf16 %v894_v62, %v894_v62  ;;  %3039 = vmatprep.subr.bf16.mxu0 %v3316_v16  ;;  %v3210_v62 = vld [vmem:[%s3945_s16 + $0x8] sm:$0xff]  }
 0x6f7   :  { %3024 = vmatmul.mubr.msk.bf16.vlgmr.msra.gmra.mxu1 %vm440_vm4, %v896_v0  ;;  %v2687_v0 = vld [vmem:[%s3944_s15] ss:$0 sm:$0xff] }
 0x6f8   :  { %3034 = vmatpush3.bf16.msra.mxu1 %v3204_v63  ;;  %3035 = vmatprep.mubr.msk.bf16.mxu1 %vm3317_vm1, %v3316_v16  ;;  %v3211_v63 = vld [vmem:[%s3945_s16] sm:$0xff]  }
 0x6f9   :  { %3047 = vmatprep.subr.bf16.mxu1 %v3316_v16 }
 0x6ff   :  { %3036 = vmatmul.mubr.msk.bf16.vlgmr.msra.gmra.mxu1 %vm343_vm2, %v558_v53 }
 0x700   :  { %3055 = vmatprep.mubr.msk.bf16.mxu1 %vm3317_vm1, %v3316_v16  ;;  %3048 = vmatpush3.bf16.msra.mxu1 %v3208_v60 }
 0x701   :  { %3049 = vmatprep.subr.bf16.mxu1 %v3316_v16 }
 0x704   :  { %3050 = vmatpush3.bf16.msra.mxu1 %v3209_v61 }
 0x705   :  { %3051 = vmatprep.subr.bf16.mxu1 %v3316_v16 }
 0x708   :  { %3052 = vmatpush3.bf16.msra.mxu1 %v3210_v62  ;;  %v3216_v62 = vld [vmem:[%s3934_s5 + $0x28] sm:$0xff]  }
 0x709   :  { %3053 = vmatprep.subr.bf16.mxu1 %v3316_v16 }
 0x70c   :  { %3054 = vmatpush3.bf16.msra.mxu1 %v3211_v63 }
 0x70d   :  { %3075 = vmatprep.subr.bf16.mxu1 %v3316_v16 }
 0x7b3   :  { %v937_v2 = vpop.f32.mrf.mxu0 }
 0x7b5   :  { %v3019_v3 = vpop.f32.mrf.mxu0 }
 0x7b7   :  { %v940_v4 = vpop.f32.mrf.mxu0  ;;  %v983_v5 = vpop.f32.mrf.mxu1 }
 0x7b8   :  { %v989_v7 = vpack.c.bf16 %v983_v5, %v937_v2 }
 0x7b9   :  { %v3020_v8 = vpop.f32.mrf.mxu0  ;;  %v3025_v9 = vpop.f32.mrf.mxu1 }
 0x7ba   :  { %3030 = vmatmul.mubr.msk.bf16.vlgmr.msra.gmra.mxu0 %vm343_vm2, %v989_v7 }
 0x7bb   :  { %v986_v49 = vpop.f32.mrf.mxu1  ;;  %3043 = vmatprep.mubr.msk.bf16.mxu0 %vm3317_vm1, %v3316_v16 }
 0x7bd   :  { %v3026_v52 = vpop.f32.mrf.mxu1 }
 0x7bf   :  { %v1086_v53 = vpop.f32.mrf.mxu1 }
 0x7c1   :  { %v3037_v10 = vpop.f32.mrf.mxu1 }
 0x7c3   :  { %v1089_v11 = vpop.f32.mrf.mxu1 }
 0x7c5   :  { %v3038_v13 = vpop.f32.mrf.mxu1 }
 0x87a   :  { %v1036_v14 = vpop.f32.mrf.mxu0 }
 0x87b   :  { %v1087_v17 = vadd.f32 %v1086_v53, %v1036_v14 }
 0x87c   :  { %v3031_v18 = vpop.f32.mrf.mxu0 }
 0x87d   :  { %v1100_v19 = vadd.f32 %v2684_v15, %v1087_v17  ;;  %v2691_v18 = vld [vmem:[%s3946_s17] ss:$0 sm:$0xff] }
 0x87e   :  { %v1039_v20 = vpop.f32.mrf.mxu0 }
 0x87f   :  { %v1090_v21 = vadd.f32 %v1089_v11, %v1039_v20  ;;  %v1102_v22 = vadd.f32 %v1100_v19, %v3464_v33 }
 0x880   :  { %v3032_v23 = vpop.f32.mrf.mxu0 }
 0x881   :  { %v1101_v24 = vadd.f32 %v2684_v15, %v1090_v21  ;;  %v1106_v25 = vsel %vm71_vm0, %v1102_v22, 0.0 }
 0x882   :  { %1107 = vadd.xlane.f32.xlu0 %v1106_v25 }
 0x883   :  { %v1103_v26 = vadd.f32 %v1101_v24, %v3466_v34  ;;  %v3206_v34 = vld [vmem:[%s3943_s14 + $0x8] sm:$0xff]  }
 0x884   :  { %3040 = vmatpush3.bf16.msra.mxu0 %v3206_v34 }
 0x885   :  { %v1109_v27 = vsel %vm71_vm0, %v1103_v26, 0.0  ;;  %3041 = vmatprep.subr.bf16.mxu0 %v3316_v16 }
 0x886   :  { %1110 = vadd.xlane.f32.xlu1 %v1109_v27 }
 0x888   :  { %3042 = vmatpush3.bf16.msra.mxu0 %v3207_v40  ;;  %v3212_v40 = vld [vmem:[%s3959_s26 + $0x28] sm:$0xff]  }
 0x889   :  { %3059 = vmatprep.subr.bf16.mxu0 %v3316_v16 }
 0x90b   :  { %v1108_v28 = vpop.xlane.xlu0 %1107 }
 0x90c   :  { %v1112_v29 = vmul.f32 0.03125, %v1108_v28 }
 0x90e   :  { %v1114_v30 = vsub.f32 %v1102_v22, %v1112_v29 }
 0x90f   :  { %v1111_v31 = vpop.xlane.xlu1 %1110 }
 0x910   :  { %v1113_v32 = vmul.f32 0.03125, %v1111_v31  ;;  %v1116_v35 = vmul.f32 %v1114_v30, %v1114_v30 }
 0x912   :  { %v1115_v37 = vsub.f32 %v1103_v26, %v1113_v32  ;;  %v1118_v38 = vsel %vm71_vm0, %v1116_v35, 0.0 }
 0x913   :  { %1119 = vadd.xlane.f32.xlu0 %v1118_v38 }
 0x914   :  { %v1117_v33 = vmul.f32 %v1115_v37, %v1115_v37 }
 0x916   :  { %v1121_v39 = vsel %vm71_vm0, %v1117_v33, 0.0 }
 0x917   :  { %1122 = vadd.xlane.f32.xlu1 %v1121_v39 }
 0x99c   :  { %v1120_v41 = vpop.xlane.xlu0 %1119 }
 0x99d   :  { %v1124_v42 = vmul.f32 0.03125, %v1120_v41  ;;  %v3213_v41 = vld [vmem:[%s3935_s6 + $0x28] sm:$0xff]  }
 0x99f   :  { %v1126_v43 = vadd.f32 1e-12, %v1124_v42  ;;  %v3214_v42 = vld [vmem:[%s3959_s26 + $0x20] sm:$0xff]  }
 0x9a0   :  { %v1123_v44 = vpop.xlane.xlu1 %1122 }
 0x9a1   :  { %3252 = vrsqrt.f32 %v1126_v43  ;;  %v1125_v45 = vmul.f32 0.03125, %v1123_v44  ;;  %v3215_v43 = vld [vmem:[%s3935_s6 + $0x20] sm:$0xff]  }
 0x9a3   :  { %v1127_v46 = vadd.f32 1e-12, %v1125_v45 }
 0x9a5   :  { %3254 = vrsqrt.f32 %v1127_v46 }
 0x9ae   :  { %v3253_v47 = vpop.eup %3252 }
 0x9af   :  { %v1130_v48 = vmul.f32 %v3253_v47, %v1114_v30 }
 0x9b1   :  { %v1138_v55 = vmul.f32 %v2685_v50, %v1130_v48 }
 0x9b2   :  { %v3255_v51 = vpop.eup %3254 }
 0x9b3   :  { %v1131_v54 = vmul.f32 %v3255_v51, %v1115_v37  ;;  %v1146_v58 = vadd.f32 %v2686_v56, %v1138_v55  ;;  %v2697_v55 = vld [vmem:[%s3947_s18] ss:$0 sm:$0xff] }
 0x9b5   :  { %v1139_v57 = vmul.f32 %v2685_v50, %v1131_v54 }
 0x9b7   :  { %v1147_v59 = vadd.f32 %v2686_v56, %v1139_v57 }
 0x9b9   :  { %v1148_v36 = vpack.c.bf16 %v1147_v59, %v1146_v58 }
 0x9bb   :  { %3044 = vmatmul.mubr.msk.bf16.vlgmr.msra.gmra.mxu0 %vm71_vm0, %v1148_v36 }
 0x9bc   :  { %3063 = vmatprep.mubr.msk.bf16.mxu0 %vm3317_vm1, %v3316_v16  ;;  %3060 = vmatpush3.bf16.msra.mxu0 %v3212_v40 }
 0x9bd   :  { %3061 = vmatprep.subr.bf16.mxu0 %v3316_v16 }
 0x9c0   :  { %3062 = vmatpush3.bf16.msra.mxu0 %v3214_v42 }
 0x9c1   :  { %3067 = vmatprep.subr.bf16.mxu0 %v3316_v16 }
 0xa7b   :  { %v1209_v1 = vpop.f32.mrf.mxu0 }
 0xa7c   :  { %v1210_v2 = vadd.f32 %v2687_v0, %v1209_v1 }
 0xa7d   :  { %v3045_v3 = vpop.f32.mrf.mxu0 }
 0xa7e   :  { %v1218_v4 = vmul.f32 0.70710677, %v1210_v2  ;;  %v1216_v10 = vmul.f32 0.5, %v1210_v2 }
 0xa7f   :  { %v1212_v5 = vpop.f32.mrf.mxu0 }
 0xa80   :  { %3256 = verf.f32 %v1218_v4  ;;  %v1213_v7 = vadd.f32 %v2687_v0, %v1212_v5  ;;  %v3217_v0 = vld [vmem:[%s3934_s5 + $0x20] sm:$0xff]  }
 0xa81   :  { %v3046_v8 = vpop.f32.mrf.mxu0 }
 0xa82   :  { %v1219_v9 = vmul.f32 0.70710677, %v1213_v7  ;;  %v1217_v11 = vmul.f32 0.5, %v1213_v7 }
 0xa84   :  { %3258 = verf.f32 %v1219_v9 }
 0xa8d   :  { %v3257_v49 = vpop.eup %3256 }
 0xa8e   :  { %v1222_v52 = vadd.f32 1.0, %v3257_v49  ;;  %v2715_v49 = vld [vmem:[%s3937_s8 + $0x2] ss:$0 sm:$0xff] }
 0xa90   :  { %v1224_v14 = vmul.f32 %v1222_v52, %v1216_v10  ;;  %v2726_v10 = vld [vmem:[%s3938_s9 + $0x2] ss:$0 sm:$0xff] }
 0xa91   :  { %v3259_v53 = vpop.eup %3258 }
 0xa92   :  { %v1223_v13 = vadd.f32 1.0, %v3259_v53 }
 0xa94   :  { %v1225_v15 = vmul.f32 %v1223_v13, %v1217_v11 }
 0xa96   :  { %v1226_v17 = vpack.c.bf16 %v1225_v15, %v1224_v14  ;;  %v2704_v14 = vld [vmem:[%s3936_s7 + $0x2] ss:$0 sm:$0xff] }
 0xa98   :  { %3056 = vmatmul.mubr.msk.bf16.vlgmr.msra.gmra.mxu1 %vm1266_vm5, %v1226_v17 }
 0xa99   :  { %3079 = vmatprep.mubr.msk.bf16.mxu1 %vm3317_vm1, %v3316_v16  ;;  %3076 = vmatpush3.bf16.msra.mxu1 %v3213_v41 }
 0xa9a   :  { %3077 = vmatprep.subr.bf16.mxu1 %v3316_v16 }
 0xa9d   :  { %3078 = vmatpush3.bf16.msra.mxu1 %v3215_v43 }
 0xa9e   :  { %3089 = vmatprep.subr.bf16.mxu1 %v3316_v16 }
 0xb58   :  { %v1304_v19 = vpop.f32.mrf.mxu1 }
 0xb59   :  { %v1305_v20 = vadd.f32 %v2691_v18, %v1304_v19 }
 0xb5a   :  { %v3057_v21 = vpop.f32.mrf.mxu1 }
 0xb5b   :  { %v1311_v22 = vadd.f32 %v1305_v20, %v1146_v58 }
 0xb5c   :  { %v1307_v23 = vpop.f32.mrf.mxu1 }
 0xb5d   :  { %v1308_v24 = vadd.f32 %v2691_v18, %v1307_v23  ;;  %v1315_v25 = vsel %vm71_vm0, %v1311_v22, 0.0 }
 0xb5e   :  { %1316 = vadd.xlane.f32.xlu0 %v1315_v25  ;;  %v3058_v26 = vpop.f32.mrf.mxu1 }
 0xb5f   :  { %v1312_v27 = vadd.f32 %v1308_v24, %v1147_v59  ;;  %v2698_v59 = vld [vmem:[%s3948_s19] ss:$0 sm:$0xff] }
 0xb61   :  { %v1318_v28 = vsel %vm71_vm0, %v1312_v27, 0.0 }
 0xb62   :  { %1319 = vadd.xlane.f32.xlu1 %v1318_v28 }
 0xbe7   :  { %v1317_v29 = vpop.xlane.xlu0 %1316 }
 0xbe8   :  { %v1321_v30 = vmul.f32 0.03125, %v1317_v29 }
 0xbea   :  { %v1323_v31 = vsub.f32 %v1311_v22, %v1321_v30 }
 0xbeb   :  { %v1320_v32 = vpop.xlane.xlu1 %1319 }
 0xbec   :  { %v1322_v35 = vmul.f32 0.03125, %v1320_v32  ;;  %v1325_v37 = vmul.f32 %v1323_v31, %v1323_v31 }
 0xbee   :  { %v1324_v38 = vsub.f32 %v1312_v27, %v1322_v35  ;;  %v1327_v33 = vsel %vm71_vm0, %v1325_v37, 0.0 }
 0xbef   :  { %1328 = vadd.xlane.f32.xlu0 %v1327_v33 }
 0xbf0   :  { %v1326_v39 = vmul.f32 %v1324_v38, %v1324_v38 }
 0xbf2   :  { %v1330_v34 = vsel %vm71_vm0, %v1326_v39, 0.0 }
 0xbf3   :  { %1331 = vadd.xlane.f32.xlu1 %v1330_v34 }
 0xc78   :  { %v1329_v44 = vpop.xlane.xlu0 %1328 }
 0xc79   :  { %v1333_v45 = vmul.f32 0.03125, %v1329_v44 }
 0xc7b   :  { %v1335_v46 = vadd.f32 1e-12, %v1333_v45 }
 0xc7c   :  { %v1332_v47 = vpop.xlane.xlu1 %1331 }
 0xc7d   :  { %3260 = vrsqrt.f32 %v1335_v46  ;;  %v1334_v48 = vmul.f32 0.03125, %v1332_v47 }
 0xc7f   :  { %v1336_v50 = vadd.f32 1e-12, %v1334_v48 }
 0xc81   :  { %3262 = vrsqrt.f32 %v1336_v50 }
 0xc8a   :  { %v3261_v51 = vpop.eup %3260 }
 0xc8b   :  { %v1339_v54 = vmul.f32 %v3261_v51, %v1323_v31 }
 0xc8d   :  { %v1347_v57 = vmul.f32 %v2697_v55, %v1339_v54 }
 0xc8e   :  { %v3263_v56 = vpop.eup %3262 }
 0xc8f   :  { %v1340_v58 = vmul.f32 %v3263_v56, %v1324_v38  ;;  %v3708_v60 = vadd.f32 %v2698_v59, %v1347_v57 }
 0xc91   :  { %v1348_v36 = vmul.f32 %v2697_v55, %v1340_v58 }
 0xc93   :  { %v3710_v61 = vadd.f32 %v2698_v59, %v1348_v36 }
 0xc95   :  { %v3717_v63 = vpack.c.bf16 %v3710_v61, %v3708_v60 }
 0xc97   :  { %3064 = vmatmul.mubr.msk.bf16.vlgmr.msra.gmra.mxu0 %vm71_vm0, %v3717_v63  ;;  %3080 = vmatmul.mubr.msk.bf16.vlgmr.msra.gmra.mxu1 %vm71_vm0, %v3717_v63 }
 0xc98   :  { %3068 = vmatpush3.bf16.msra.mxu0 %v3216_v62  ;;  %3071 = vmatprep.mubr.msk.bf16.mxu0 %vm3317_vm1, %v3316_v16 }
 0xc99   :  { %3069 = vmatprep.subr.bf16.mxu0 %v3316_v16  ;;  %3091 = vmatprep.mubr.msk.bf16.mxu1 %vm3317_vm1, %v3316_v16 }
 0xc9c   :  { %3070 = vmatpush3.bf16.msra.mxu0 %v3217_v0  ;;  %v3218_v0 = vld [vmem:[%s3959_s26 + $0x38] sm:$0xff]  }
 0xc9d   :  { %3083 = vmatprep.subr.bf16.mxu0 %v3316_v16 }
 0xc9f   :  { %3072 = vmatmul.mubr.msk.bf16.vlgmr.msra.gmra.mxu0 %vm71_vm0, %v3717_v63 }
 0xca0   :  { %3085 = vmatprep.mubr.msk.bf16.mxu0 %vm3317_vm1, %v3316_v16 }
 0xd57   :  { %v1420_v1 = vpop.f32.mrf.mxu0  ;;  %v1564_v2 = vpop.f32.mrf.mxu1 }
 0xd58   :  { %v1565_v17 = vadd.f32 %v2726_v10, %v1564_v2  ;;  %v1421_v21 = vadd.f32 %v2704_v14, %v1420_v1 }
 0xd59   :  { %v3065_v3 = vpop.f32.mrf.mxu0  ;;  %v3081_v4 = vpop.f32.mrf.mxu1 }
 0xd5a   :  { %v2831_v23 = vpack.c.bf16 %v1565_v17, %v1565_v17  ;;  %v2827_v26 = vpack.c.bf16 %v1421_v21, %v1421_v21  ;;  %v3219_v4 = vld [vmem:[%s3959_s26 + $0x30] sm:$0xff]  }
 0xd5b   :  { %v1423_v5 = vpop.f32.mrf.mxu0  ;;  %v1567_v7 = vpop.f32.mrf.mxu1 }
 0xd5c   :  { %v1568_v24 = vadd.f32 %v2726_v10, %v1567_v7  ;;  %v1424_v27 = vadd.f32 %v2704_v14, %v1423_v5  ;;  %v1701_v28 = vsel %vm468_vm3, %v2831_v23, 0  ;;  %v3220_v5 = vld [vmem:[%s3934_s5 + $0x38] sm:$0xff]  }
 0xd5d   :  { %v3066_v8 = vpop.f32.mrf.mxu0  ;;  %v3082_v9 = vpop.f32.mrf.mxu1 }
 0xd5e   :  { %v2832_v29 = vpack.c.bf16 %v1568_v24, %v1568_v24  ;;  %v2828_v30 = vpack.c.bf16 %v1424_v27, %v1424_v27  ;;  %v3221_v8 = vld [vmem:[%s3934_s5 + $0x30] sm:$0xff]   ;;  %v3222_v9 = vld [vmem:[%s3935_s6 + $0x38] sm:$0xff]  }
 0xd5f   :  { %v1492_v52 = vpop.f32.mrf.mxu0 }
 0xd60   :  { %v1493_v53 = vadd.f32 %v2715_v49, %v1492_v52  ;;  %v1747_v31 = vsel %vm468_vm3, %v2832_v29, 0 }
 0xd61   :  { %v3073_v11 = vpop.f32.mrf.mxu0 }
 0xd62   :  { %v2829_v13 = vpack.c.bf16 %v1493_v53, %v1493_v53 }
 0xd63   :  { %v1495_v15 = vpop.f32.mrf.mxu0 }
 0xd64   :  { %v1581_v18 = vsel %vm343_vm2, %v2829_v13, 0  ;;  %v1496_v19 = vadd.f32 %v2715_v49, %v1495_v15  ;;  %v3223_v49 = vld [vmem:[%s3935_s6 + $0x30] sm:$0xff]  }
 0xd65   :  { %v3074_v20 = vpop.f32.mrf.mxu0  ;;  %3084 = vmatpush3.bf16.xpose.msra.mxu0 %v1581_v18 }
 0xd66   :  { %v2830_v22 = vpack.c.bf16 %v1496_v19, %v1496_v19  ;;  %3095 = vmatprep.subr.bf16.mxu0 %v3316_v16 }
 0xd68   :  { %v1627_v25 = vsel %vm343_vm2, %v2830_v22, 0 }
 0xd69   :  { %3090 = vmatpush3.bf16.xpose.msra.mxu1 %v1627_v25 }
 0xd6a   :  { %3101 = vmatprep.subr.bf16.mxu1 %v3316_v16 }
 0xd6c   :  { %3086 = vmatmul.mubr.msk.bf16.vlgmr.msra.gmra.mxu0 %vm343_vm2, %v2827_v26  ;;  %v2765_v26 = vld [vmem:[%s3938_s9 + $0x3] ss:$0 sm:$0xff] }
 0xd6d   :  { %3096 = vmatpush3.bf16.msra.mxu0 %v1701_v28  ;;  %3097 = vmatprep.mubr.msk.bf16.mxu0 %vm3317_vm1, %v3316_v16  ;;  %v2743_v28 = vld [vmem:[%s3936_s7 + $0x3] ss:$0 sm:$0xff] }
 0xd6e   :  { %3107 = vmatprep.subr.bf16.mxu0 %v3316_v16 }
 0xd70   :  { %3092 = vmatmul.mubr.msk.bf16.vlgmr.msra.gmra.mxu1 %vm343_vm2, %v2828_v30 }
 0xd71   :  { %3102 = vmatpush3.bf16.msra.mxu1 %v1747_v31  ;;  %3103 = vmatprep.mubr.msk.bf16.mxu1 %vm3317_vm1, %v3316_v16 }
 0xd72   :  { %3115 = vmatprep.subr.bf16.mxu1 %v3316_v16 }
 0xe2c   :  { %v1617_v32 = vpop.f32.mrf.mxu0 }
 0xe2d   :  { %v1669_v35 = vmul.f32 0.25, %v1617_v32 }
 0xe2e   :  { %v3087_v37 = vpop.f32.mrf.mxu0 }
 0xe2f   :  { %v1671_v38 = vadd.f32 %v3518_v6, %v1669_v35 }
 0xe30   :  { %v1620_v33 = vpop.f32.mrf.mxu0  ;;  %v1663_v39 = vpop.f32.mrf.mxu1 }
 0xe31   :  { %v1670_v34 = vmul.f32 0.25, %v1663_v39  ;;  %v1673_v40 = vsel %vm440_vm4, %v1671_v38, -inf }
 0xe32   :  { %1674 = vmax.xlane.f32.xlu1 %v1673_v40  ;;  %v3088_v41 = vpop.f32.mrf.mxu0  ;;  %v3093_v42 = vpop.f32.mrf.mxu1 }
 0xe33   :  { %v1672_v43 = vadd.f32 %v3524_v12, %v1670_v34 }
 0xe34   :  { %v1666_v44 = vpop.f32.mrf.mxu1 }
 0xe35   :  { %v1676_v45 = vsel %vm440_vm4, %v1672_v43, -inf }
 0xe36   :  { %1677 = vmax.xlane.f32.xlu0 %v1676_v45  ;;  %v3094_v46 = vpop.f32.mrf.mxu1 }
 0xebb   :  { %v1675_v47 = vpop.xlane.xlu1 %1674 }
 0xebc   :  { %v1679_v48 = vsub.f32 %v1671_v38, %v1675_v47 }
 0xebe   :  { %v1681_v50 = vmul.f32 1.442695, %v1679_v48 }
 0xebf   :  { %v1678_v51 = vpop.xlane.xlu0 %1677 }
 0xec0   :  { %3264 = vpow2.f32 %v1681_v50  ;;  %v1680_v6 = vsub.f32 %v1672_v43, %v1678_v51 }
 0xec2   :  { %v1683_v54 = vmul.f32 1.442695, %v1680_v6 }
 0xec4   :  { %3266 = vpow2.f32 %v1683_v54 }
 0xecd   :  { %v3265_v55 = vpop.eup %3264 }
 0xece   :  { %v1685_v56 = vsel %vm440_vm4, %v3265_v55, 0.0 }
 0xecf   :  { %1686 = vadd.xlane.f32.xlu1 %v1685_v56 }
 0xed1   :  { %v3267_v57 = vpop.eup %3266 }
 0xed2   :  { %v1688_v12 = vsel %vm440_vm4, %v3267_v57, 0.0 }
 0xed3   :  { %1689 = vadd.xlane.f32.xlu0 %v1688_v12 }
 0xf58   :  { %v1687_v58 = vpop.xlane.xlu1 %1686 }
 0xf59   :  { %3268 = vrcp.f32 %v1687_v58 }
 0xf5c   :  { %v1690_v59 = vpop.xlane.xlu0 %1689 }
 0xf5d   :  { %3270 = vrcp.f32 %v1690_v59 }
 0xf66   :  { %v3269_v36 = vpop.eup %3268 }
 0xf67   :  { %v1693_v62 = vmul.f32 %v3269_v36, %v3265_v55  ;;  %v3292_v55 = vld [vmem:[%s3962_s24] ss:$0 sm:$0xff] }
 0xf69   :  { %v1695_v1 = vpack.c.bf16 %v1693_v62, %v1693_v62 }
 0xf6a   :  { %v3271_v2 = vpop.eup %3270 }
 0xf6b   :  { %3098 = vmatmul.mubr.msk.bf16.vlgmr.msra.gmra.mxu0 %vm440_vm4, %v1695_v1  ;;  %v1694_v3 = vmul.f32 %v3271_v2, %v3267_v57 }
 0xf6c   :  { %3108 = vmatpush3.bf16.msra.mxu0 %v3218_v0  ;;  %3111 = vmatprep.mubr.msk.bf16.mxu0 %vm3317_vm1, %v3316_v16  ;;  %v3293_v0 = vld [vmem:[%s3962_s24 + $0x1] ss:$0 sm:$0xff] }
 0xf6d   :  { %v1696_v7 = vpack.c.bf16 %v1694_v3, %v1694_v3  ;;  %3109 = vmatprep.subr.bf16.mxu0 %v3316_v16 }
 0xf6f   :  { %3104 = vmatmul.mubr.msk.bf16.vlgmr.msra.gmra.mxu1 %vm440_vm4, %v1696_v7 }
 0xf70   :  { %3110 = vmatpush3.bf16.msra.mxu0 %v3219_v4  ;;  %3116 = vmatpush3.bf16.msra.mxu1 %v3220_v5 }
 0xf71   :  { %3117 = vmatprep.subr.bf16.mxu1 %v3316_v16  ;;  %3123 = vmatprep.subr.bf16.mxu0 %v3316_v16 }
 0xf72   :  { %3119 = vmatprep.mubr.msk.bf16.mxu1 %vm3317_vm1, %v3316_v16 }
 0xf73   :  { %3112 = vmatmul.mubr.msk.bf16.vlgmr.msra.gmra.mxu0 %vm71_vm0, %v3717_v63 }
 0xf74   :  { %3118 = vmatpush3.bf16.msra.mxu1 %v3221_v8  ;;  %3124 = vmatpush3.bf16.msra.mxu0 %v3222_v9 }
 0xf75   :  { %3125 = vmatprep.subr.bf16.mxu0 %v3316_v16  ;;  %3127 = vmatprep.mubr.msk.bf16.mxu0 %vm3317_vm1, %v3316_v16 }
 0xf76   :  { %3131 = vmatprep.subr.bf16.mxu1 %v3316_v16 }
 0xf77   :  { %3120 = vmatmul.mubr.msk.bf16.vlgmr.msra.gmra.mxu1 %vm71_vm0, %v3717_v63 }
 0xf78   :  { %3126 = vmatpush3.bf16.msra.mxu0 %v3223_v49  ;;  %3133 = vmatprep.mubr.msk.bf16.mxu1 %vm3317_vm1, %v3316_v16 }
 0xf79   :  { %3137 = vmatprep.subr.bf16.mxu0 %v3316_v16 }
 0xf7b   :  { %3128 = vmatmul.mubr.msk.bf16.vlgmr.msra.gmra.mxu0 %vm71_vm0, %v3717_v63  ;;  %v2754_v63 = vld [vmem:[%s3937_s8 + $0x3] ss:$0 sm:$0xff] }
 0xf7c   :  { %3139 = vmatprep.mubr.msk.bf16.mxu0 %vm3317_vm1, %v3316_v16 }
0x102b   :  { %v3807_v52 = vpop.f32.mrf.mxu0 }
0x102d   :  { %v3099_v53 = vpop.f32.mrf.mxu0 }
0x102f   :  { %v1740_v10 = vpop.f32.mrf.mxu0  ;;  %v3809_v11 = vpop.f32.mrf.mxu1 }
0x1030   :  { %v1789_v13 = vpack.c.bf16 %v3809_v11, %v3807_v52 }
0x1031   :  { %v3100_v14 = vpop.f32.mrf.mxu0  ;;  %v3105_v15 = vpop.f32.mrf.mxu1 }
0x1033   :  { %v1786_v17 = vpop.f32.mrf.mxu1  ;;  %v1852_v18 = vpop.f32.mrf.mxu0 }
0x1034   :  { %v1853_v33 = vadd.f32 %v2743_v28, %v1852_v18 }
0x1035   :  { %v3106_v19 = vpop.f32.mrf.mxu1  ;;  %v3113_v20 = vpop.f32.mrf.mxu0 }
0x1036   :  { %v2833_v44 = vpack.c.bf16 %v1853_v33, %v1853_v33 }
0x1037   :  { %v1855_v21 = vpop.f32.mrf.mxu0  ;;  %v1924_v22 = vpop.f32.mrf.mxu1 }
0x1038   :  { %v1925_v23 = vadd.f32 %v2754_v63, %v1924_v22  ;;  %v1856_v45 = vadd.f32 %v2743_v28, %v1855_v21 }
0x1039   :  { %v3114_v24 = vpop.f32.mrf.mxu0  ;;  %v3121_v25 = vpop.f32.mrf.mxu1 }
0x103a   :  { %v2835_v27 = vpack.c.bf16 %v1925_v23, %v1925_v23  ;;  %v2834_v48 = vpack.c.bf16 %v1856_v45, %v1856_v45  ;;  %v3224_v24 = vld [vmem:[%s3939_s10 + $0x10] sm:$0xff]  }
0x103b   :  { %v1927_v29 = vpop.f32.mrf.mxu1  ;;  %v1996_v30 = vpop.f32.mrf.mxu0 }
0x103c   :  { %v2013_v31 = vsel %vm343_vm2, %v2835_v27, 0  ;;  %v1928_v32 = vadd.f32 %v2754_v63, %v1927_v29  ;;  %v1997_v35 = vadd.f32 %v2765_v26, %v1996_v30 }
0x103d   :  { %v3122_v37 = vpop.f32.mrf.mxu1  ;;  %v3129_v38 = vpop.f32.mrf.mxu0  ;;  %3132 = vmatpush3.bf16.xpose.msra.mxu1 %v2013_v31 }
0x103e   :  { %v2836_v39 = vpack.c.bf16 %v1928_v32, %v1928_v32  ;;  %3143 = vmatprep.subr.bf16.mxu1 %v3316_v16  ;;  %v2837_v41 = vpack.c.bf16 %v1997_v35, %v1997_v35 }
0x103f   :  { %v1999_v34 = vpop.f32.mrf.mxu0 }
0x1040   :  { %v2059_v40 = vsel %vm343_vm2, %v2836_v39, 0  ;;  %v2000_v42 = vadd.f32 %v2765_v26, %v1999_v34  ;;  %v2133_v46 = vsel %vm468_vm3, %v2837_v41, 0  ;;  %v3225_v26 = vld [vmem:[%s3939_s10 + $0x18] sm:$0xff]   ;;  %v2782_v34 = vld [vmem:[%s3940_s11 + $0x1] ss:$0 sm:$0xff]  ;;  %s3294_s10 = scalar_lea.vmem %s2605_s0, 256 }
0x1041   :  { %v3130_v43 = vpop.f32.mrf.mxu0  ;;  %3138 = vmatpush3.bf16.xpose.msra.mxu0 %v2059_v40  ;;  %p3295_p0 = scmp.ne.s32.totalorder %s2605_s0, %s3294_s10  ;;  %p3300_p2 = scmp.lt.s32.totalorder %s3294_s10, %s3294_s10 }
0x1042   :  { %3149 = vmatprep.subr.bf16.mxu0 %v3316_v16  ;;  %v2838_v47 = vpack.c.bf16 %v2000_v42, %v2000_v42 }
0x1043   :  { %p3301_p3 = por %p3300_p2, %p3299_p1 }
0x1044   :  { %3134 = vmatmul.mubr.msk.bf16.vlgmr.msra.gmra.mxu1 %vm343_vm2, %v2833_v44  ;;  %v2179_v50 = vsel %vm468_vm3, %v2838_v47, 0 }
0x1045   :  { %3144 = vmatpush3.bf16.msra.mxu1 %v2133_v46  ;;  %3145 = vmatprep.mubr.msk.bf16.mxu1 %vm3317_vm1, %v3316_v16  ;;  %p3302_p4 = pnand %p3301_p3, %p3295_p0 }
0x1046   :  { %3155 = vmatprep.subr.bf16.mxu1 %v3316_v16 }
0x1048   :  { %3140 = vmatmul.mubr.msk.bf16.vlgmr.msra.gmra.mxu0 %vm343_vm2, %v2834_v48 }
0x1049   :  { %3150 = vmatpush3.bf16.msra.mxu0 %v2179_v50  ;;  %3151 = vmatprep.mubr.msk.bf16.mxu0 %vm3317_vm1, %v3316_v16 }
0x104a   :  { %3161 = vmatprep.subr.bf16.mxu0 %v3316_v16 }
0x1104   :  { %v2049_v51 = vpop.f32.mrf.mxu1 }
0x1105   :  { %v2101_v6 = vmul.f32 0.25, %v2049_v51 }
0x1106   :  { %v3135_v54 = vpop.f32.mrf.mxu1 }
0x1107   :  { %v2103_v56 = vadd.f32 %v3292_v55, %v2101_v6 }
0x1108   :  { %v2052_v57 = vpop.f32.mrf.mxu1  ;;  %v2095_v12 = vpop.f32.mrf.mxu0 }
0x1109   :  { %v2102_v58 = vmul.f32 0.25, %v2095_v12  ;;  %v2105_v59 = vsel %vm440_vm4, %v2103_v56, -inf }
0x110a   :  { %v3141_v36 = vpop.f32.mrf.mxu0  ;;  %2106 = vmax.xlane.f32.xlu0 %v2105_v59  ;;  %v3136_v62 = vpop.f32.mrf.mxu1 }
0x110b   :  { %v2104_v1 = vadd.f32 %v3293_v0, %v2102_v58  ;;  %v3227_v62 = vld [vmem:[%s3943_s14 + $0x10] sm:$0xff]  }
0x110c   :  { %v2098_v2 = vpop.f32.mrf.mxu0 }
0x110d   :  { %v2108_v3 = vsel %vm440_vm4, %v2104_v1, -inf }
0x110e   :  { %2109 = vmax.xlane.f32.xlu1 %v2108_v3  ;;  %v3142_v4 = vpop.f32.mrf.mxu0 }
0x1193   :  { %v2107_v5 = vpop.xlane.xlu0 %2106 }
0x1194   :  { %v2111_v7 = vsub.f32 %v2103_v56, %v2107_v5 }
0x1196   :  { %v2113_v8 = vmul.f32 1.442695, %v2111_v7 }
0x1197   :  { %v2110_v9 = vpop.xlane.xlu1 %2109 }
0x1198   :  { %3272 = vpow2.f32 %v2113_v8  ;;  %v2112_v49 = vsub.f32 %v2104_v1, %v2110_v9  ;;  %v2785_v9 = vld [vmem:[%s3941_s12 + $0x1] ss:$0 sm:$0xff] }
0x119a   :  { %v2115_v53 = vmul.f32 1.442695, %v2112_v49 }
0x119c   :  { %3274 = vpow2.f32 %v2115_v53 }
0x11a5   :  { %v3273_v10 = vpop.eup %3272 }
0x11a6   :  { %v2117_v14 = vsel %vm440_vm4, %v3273_v10, 0.0 }
0x11a7   :  { %2118 = vadd.xlane.f32.xlu0 %v2117_v14  ;;  %v2786_v14 = vld [vmem:[%s3942_s13 + $0x1] ss:$0 sm:$0xff] }
0x11a9   :  { %v3275_v15 = vpop.eup %3274 }
0x11aa   :  { %v2120_v17 = vsel %vm440_vm4, %v3275_v15, 0.0 }
0x11ab   :  { %2121 = vadd.xlane.f32.xlu1 %v2120_v17 }
0x1230   :  { %v2119_v18 = vpop.xlane.xlu0 %2118 }
0x1231   :  { %3276 = vrcp.f32 %v2119_v18 }
0x1234   :  { %v2122_v19 = vpop.xlane.xlu1 %2121 }
0x1235   :  { %3278 = vrcp.f32 %v2122_v19 }
0x123e   :  { %v3277_v20 = vpop.eup %3276 }
0x123f   :  { %v2125_v63 = vmul.f32 %v3277_v20, %v3273_v10  ;;  %v3228_v20 = vld [vmem:[%s3945_s16 + $0x38] sm:$0xff]  }
0x1241   :  { %v2127_v21 = vpack.c.bf16 %v2125_v63, %v2125_v63  ;;  %v3229_v63 = vld [vmem:[%s3945_s16 + $0x30] sm:$0xff]  }
0x1242   :  { %v3279_v22 = vpop.eup %3278 }
0x1243   :  { %3146 = vmatmul.mubr.msk.bf16.vlgmr.msra.gmra.mxu1 %vm440_vm4, %v2127_v21  ;;  %v2126_v23 = vmul.f32 %v3279_v22, %v3275_v15  ;;  %v3230_v21 = vld [vmem:[%s3945_s16 + $0x28] sm:$0xff]   ;;  %v3231_v22 = vld [vmem:[%s3945_s16 + $0x20] sm:$0xff]  }
0x1244   :  { %3157 = vmatprep.mubr.msk.bf16.mxu1 %vm3317_vm1, %v3316_v16  ;;  %3156 = vmatpush3.bf16.msra.mxu1 %v3225_v26 }
0x1245   :  { %v2128_v25 = vpack.c.bf16 %v2126_v23, %v2126_v23  ;;  %3167 = vmatprep.subr.bf16.mxu1 %v3316_v16  ;;  %v2792_v23 = vld [vmem:[%s3944_s15 + $0x1] ss:$0 sm:$0xff] }
0x1247   :  { %3152 = vmatmul.mubr.msk.bf16.vlgmr.msra.gmra.mxu0 %vm440_vm4, %v2128_v25 }
0x1248   :  { %3162 = vmatpush3.bf16.msra.mxu0 %v3224_v24  ;;  %3163 = vmatprep.mubr.msk.bf16.mxu0 %vm3317_vm1, %v3316_v16 }
0x1249   :  { %3175 = vmatprep.subr.bf16.mxu0 %v3316_v16 }
0x124f   :  { %3164 = vmatmul.mubr.msk.bf16.vlgmr.msra.gmra.mxu0 %vm343_vm2, %v1789_v13 }
0x1250   :  { %3183 = vmatprep.mubr.msk.bf16.mxu0 %vm3317_vm1, %v3316_v16  ;;  %3176 = vmatpush3.bf16.msra.mxu0 %v3228_v20 }
0x1251   :  { %3177 = vmatprep.subr.bf16.mxu0 %v3316_v16 }
0x1254   :  { %3178 = vmatpush3.bf16.msra.mxu0 %v3229_v63 }
0x1255   :  { %3179 = vmatprep.subr.bf16.mxu0 %v3316_v16 }
0x1258   :  { %3180 = vmatpush3.bf16.msra.mxu0 %v3230_v21 }
0x1259   :  { %3181 = vmatprep.subr.bf16.mxu0 %v3316_v16 }
0x125c   :  { %3182 = vmatpush3.bf16.msra.mxu0 %v3231_v22 }
0x1303   :  { %v2169_v27 = vpop.f32.mrf.mxu1 }
0x1305   :  { %v3147_v28 = vpop.f32.mrf.mxu1 }
0x1307   :  { %v2172_v29 = vpop.f32.mrf.mxu1  ;;  %v2215_v30 = vpop.f32.mrf.mxu0 }
0x1308   :  { %v2221_v31 = vpack.c.bf16 %v2215_v30, %v2169_v27 }
0x1309   :  { %v3148_v32 = vpop.f32.mrf.mxu1  ;;  %v3153_v35 = vpop.f32.mrf.mxu0 }
0x130a   :  { %3158 = vmatmul.mubr.msk.bf16.vlgmr.msra.gmra.mxu1 %vm343_vm2, %v2221_v31 }
0x130b   :  { %v2218_v52 = vpop.f32.mrf.mxu0  ;;  %3171 = vmatprep.mubr.msk.bf16.mxu1 %vm3317_vm1, %v3316_v16 }
0x130d   :  { %v3154_v11 = vpop.f32.mrf.mxu0 }
0x130f   :  { %v2318_v13 = vpop.f32.mrf.mxu0 }
0x1311   :  { %v3165_v37 = vpop.f32.mrf.mxu0 }
0x1313   :  { %v2321_v38 = vpop.f32.mrf.mxu0 }
0x1315   :  { %v3166_v33 = vpop.f32.mrf.mxu0 }
0x13ca   :  { %v2268_v39 = vpop.f32.mrf.mxu1 }
0x13cb   :  { %v2319_v40 = vadd.f32 %v2318_v13, %v2268_v39  ;;  %v2805_v39 = vld [vmem:[%s3946_s17 + $0x1] ss:$0 sm:$0xff] }
0x13cc   :  { %v3159_v41 = vpop.f32.mrf.mxu1 }
0x13cd   :  { %v2333_v42 = vadd.f32 %v2782_v34, %v2319_v40 }
0x13ce   :  { %v2271_v43 = vpop.f32.mrf.mxu1 }
0x13cf   :  { %v2322_v44 = vadd.f32 %v2321_v38, %v2271_v43  ;;  %v2335_v45 = vadd.f32 %v2333_v42, %v3708_v60 }
0x13d0   :  { %v3160_v46 = vpop.f32.mrf.mxu1 }
0x13d1   :  { %v2334_v47 = vadd.f32 %v2782_v34, %v2322_v44  ;;  %v2341_v48 = vsel %vm71_vm0, %v2335_v45, 0.0 }
0x13d2   :  { %2342 = vadd.xlane.f32.xlu0 %v2341_v48 }
0x13d3   :  { %v2336_v50 = vadd.f32 %v2334_v47, %v3710_v61  ;;  %v3226_v61 = vld [vmem:[%s3943_s14 + $0x18] sm:$0xff]  }
0x13d4   :  { %3168 = vmatpush3.bf16.msra.mxu1 %v3226_v61 }
0x13d5   :  { %v2344_v51 = vsel %vm71_vm0, %v2336_v50, 0.0  ;;  %3169 = vmatprep.subr.bf16.mxu1 %v3316_v16 }
0x13d6   :  { %2345 = vadd.xlane.f32.xlu1 %v2344_v51 }
0x13d8   :  { %3170 = vmatpush3.bf16.msra.mxu1 %v3227_v62 }
0x145b   :  { %v2343_v6 = vpop.xlane.xlu0 %2342 }
0x145c   :  { %v2347_v54 = vmul.f32 0.03125, %v2343_v6 }
0x145e   :  { %v2349_v55 = vsub.f32 %v2335_v45, %v2347_v54 }
0x145f   :  { %v2346_v56 = vpop.xlane.xlu1 %2345 }
0x1460   :  { %v2348_v57 = vmul.f32 0.03125, %v2346_v56  ;;  %v2351_v12 = vmul.f32 %v2349_v55, %v2349_v55 }
0x1462   :  { %v2350_v58 = vsub.f32 %v2336_v50, %v2348_v57  ;;  %v2353_v59 = vsel %vm71_vm0, %v2351_v12, 0.0 }
0x1463   :  { %2354 = vadd.xlane.f32.xlu0 %v2353_v59 }
0x1464   :  { %v2352_v60 = vmul.f32 %v2350_v58, %v2350_v58 }
0x1466   :  { %v2356_v36 = vsel %vm71_vm0, %v2352_v60, 0.0 }
0x1467   :  { %2357 = vadd.xlane.f32.xlu1 %v2356_v36 }
0x14ec   :  { %v2355_v0 = vpop.xlane.xlu0 %2354 }
0x14ed   :  { %v2359_v1 = vmul.f32 0.03125, %v2355_v0 }
0x14ef   :  { %v2361_v2 = vadd.f32 1e-12, %v2359_v1 }
0x14f0   :  { %v2358_v3 = vpop.xlane.xlu1 %2357 }
0x14f1   :  { %3280 = vrsqrt.f32 %v2361_v2  ;;  %v2360_v4 = vmul.f32 0.03125, %v2358_v3  ;;  %v2813_v3 = vld [vmem:[%s3947_s18 + $0x1] ss:$0 sm:$0xff] }
0x14f3   :  { %v2362_v5 = vadd.f32 1e-12, %v2360_v4 }
0x14f5   :  { %3282 = vrsqrt.f32 %v2362_v5  ;;  %v2814_v5 = vld [vmem:[%s3948_s19 + $0x1] ss:$0 sm:$0xff] }
0x14fe   :  { %v3281_v7 = vpop.eup %3280 }
0x14ff   :  { %v2365_v8 = vmul.f32 %v3281_v7, %v2349_v55 }
0x1501   :  { %v2373_v10 = vmul.f32 %v2785_v9, %v2365_v8 }
0x1502   :  { %v3283_v49 = vpop.eup %3282 }
0x1503   :  { %v2366_v53 = vmul.f32 %v3283_v49, %v2350_v58  ;;  %v2381_v17 = vadd.f32 %v2786_v14, %v2373_v10 }
0x1505   :  { %v2374_v15 = vmul.f32 %v2785_v9, %v2366_v53 }
0x1507   :  { %v2382_v18 = vadd.f32 %v2786_v14, %v2374_v15 }
0x1509   :  { %v2383_v19 = vpack.c.bf16 %v2382_v18, %v2381_v17 }
0x150b   :  { %3172 = vmatmul.mubr.msk.bf16.vlgmr.msra.gmra.mxu1 %vm71_vm0, %v2383_v19 }
0x15cb   :  { %v2446_v24 = vpop.f32.mrf.mxu1 }
0x15cc   :  { %v2447_v25 = vadd.f32 %v2792_v23, %v2446_v24 }
0x15cd   :  { %v3173_v26 = vpop.f32.mrf.mxu1 }
0x15ce   :  { %v2455_v27 = vmul.f32 0.70710677, %v2447_v25  ;;  %v2453_v52 = vmul.f32 0.5, %v2447_v25 }
0x15cf   :  { %v2449_v28 = vpop.f32.mrf.mxu1 }
0x15d0   :  { %3284 = verf.f32 %v2455_v27  ;;  %v2450_v29 = vadd.f32 %v2792_v23, %v2449_v28 }
0x15d1   :  { %v3174_v30 = vpop.f32.mrf.mxu1 }
0x15d2   :  { %v2456_v31 = vmul.f32 0.70710677, %v2450_v29  ;;  %v2454_v11 = vmul.f32 0.5, %v2450_v29 }
0x15d4   :  { %3286 = verf.f32 %v2456_v31 }
0x15dd   :  { %v3285_v16 = vpop.eup %3284 }
0x15de   :  { %v2459_v32 = vadd.f32 1.0, %v3285_v16 }
0x15e0   :  { %v2461_v37 = vmul.f32 %v2459_v32, %v2453_v52 }
0x15e1   :  { %v3287_v35 = vpop.eup %3286 }
0x15e2   :  { %v2460_v13 = vadd.f32 1.0, %v3287_v35 }
0x15e4   :  { %v2462_v38 = vmul.f32 %v2460_v13, %v2454_v11 }
0x15e6   :  { %v2463_v33 = vpack.c.bf16 %v2462_v38, %v2461_v37 }
0x15e8   :  { %3184 = vmatmul.mubr.msk.bf16.vlgmr.msra.gmra.mxu0 %vm1266_vm5, %v2463_v33 }
0x16a8   :  { %v2542_v34 = vpop.f32.mrf.mxu0 }
0x16a9   :  { %v2543_v40 = vadd.f32 %v2805_v39, %v2542_v34 }
0x16aa   :  { %v3185_v41 = vpop.f32.mrf.mxu0 }
0x16ab   :  { %v2549_v42 = vadd.f32 %v2543_v40, %v2381_v17 }
0x16ac   :  { %v2545_v43 = vpop.f32.mrf.mxu0 }
0x16ad   :  { %v2546_v44 = vadd.f32 %v2805_v39, %v2545_v43  ;;  %v2555_v45 = vsel %vm71_vm0, %v2549_v42, 0.0 }
0x16ae   :  { %2556 = vadd.xlane.f32.xlu0 %v2555_v45  ;;  %v3186_v46 = vpop.f32.mrf.mxu0 }
0x16af   :  { %v2550_v47 = vadd.f32 %v2546_v44, %v2382_v18 }
0x16b1   :  { %v2558_v48 = vsel %vm71_vm0, %v2550_v47, 0.0 }
0x16b2   :  { %2559 = vadd.xlane.f32.xlu1 %v2558_v48 }
0x1737   :  { %v2557_v50 = vpop.xlane.xlu0 %2556 }
0x1738   :  { %v2561_v51 = vmul.f32 0.03125, %v2557_v50 }
0x173a   :  { %v2563_v6 = vsub.f32 %v2549_v42, %v2561_v51 }
0x173b   :  { %v2560_v54 = vpop.xlane.xlu1 %2559 }
0x173c   :  { %v2562_v55 = vmul.f32 0.03125, %v2560_v54  ;;  %v2565_v56 = vmul.f32 %v2563_v6, %v2563_v6 }
0x173e   :  { %v2564_v57 = vsub.f32 %v2550_v47, %v2562_v55  ;;  %v2567_v12 = vsel %vm71_vm0, %v2565_v56, 0.0 }
0x173f   :  { %2568 = vadd.xlane.f32.xlu0 %v2567_v12 }
0x1740   :  { %v2566_v58 = vmul.f32 %v2564_v57, %v2564_v57 }
0x1742   :  { %v2570_v59 = vsel %vm71_vm0, %v2566_v58, 0.0 }
0x1743   :  { %2571 = vadd.xlane.f32.xlu1 %v2570_v59 }
0x17c8   :  { %v2569_v60 = vpop.xlane.xlu0 %2568 }
0x17c9   :  { %v2573_v36 = vmul.f32 0.03125, %v2569_v60 }
0x17cb   :  { %v2575_v61 = vadd.f32 1e-12, %v2573_v36 }
0x17cc   :  { %v2572_v62 = vpop.xlane.xlu1 %2571 }
0x17cd   :  { %3288 = vrsqrt.f32 %v2575_v61  ;;  %v2574_v0 = vmul.f32 0.03125, %v2572_v62 }
0x17cf   :  { %v2576_v1 = vadd.f32 1e-12, %v2574_v0 }
0x17d1   :  { %3290 = vrsqrt.f32 %v2576_v1 }
0x17da   :  { %v3289_v2 = vpop.eup %3288 }
0x17db   :  { %v2579_v4 = vmul.f32 %v3289_v2, %v2563_v6 }
0x17dd   :  { %v2587_v7 = vmul.f32 %v2813_v3, %v2579_v4 }
0x17de   :  { %v3291_v8 = vpop.eup %3290 }
0x17df   :  { %v2580_v9 = vmul.f32 %v3291_v8, %v2564_v57  ;;  %v2595_v49 = vadd.f32 %v2814_v5, %v2587_v7 }
0x17e1   :  { %v2588_v53 = vmul.f32 %v2813_v3, %v2580_v9  ;;  %2597 = vst.msk [vmem:[#allocation2] sm:$0xff] %vm71_vm0, %v2595_v49 }
0x17e3   :  { %v2596_v10 = vadd.f32 %v2814_v5, %v2588_v53 }
0x17e5   :  { %2598 = vst.msk [vmem:[#allocation2 + $0x8] sm:$0xff] %vm71_vm0, %v2596_v10 }
0x17e6   :  { %3305 = shalt.err (!%p3302_p4)
}
0x17e7   :  { %s3319_s18 = smov 128   ;;  %s3320_s19 = smov 8  }
0x17e8   :  { %2610 = dma.vmem_to_hbm [thread:$0]  %s2605_s0, 256, %s3949_s20, [#allocation3], %s3319_s18, %s3319_s18, %s3320_s19  }
0x17e9   :  { %3314 = dma.done.wait [#allocation3], 256  }
0x17ea   :  { %3315 = vsyncadd [#allocation3], 4294967040 }
0x17eb   :  { %2614 = vsyncpa [#allocation3], 1 }

</bundles_post_ra>
